<compile_context>
chip_gen: v6e
topology: v6e:2x2x1
jax: 0.10.0
libtpu: 0.0.40
codegen_flags: <defaults>
</compile_context>

<pallas_src>
import math
import numpy as np
import jax
import jax.numpy as jnp
from jax import lax
from jax.experimental import pallas as pl
from jax.experimental.pallas import tpu as pltpu

BN_EPS = 1e-5
TB = 8   # images per grid step; a multiple of 8 keeps every slice sublane-aligned


# ---------------------------------------------------------------------------
# Static row layout of the packed bf16 weight slab (16-row-aligned sections so
# every section start is tile-aligned for bf16's (16,128) sublane packing).
# ---------------------------------------------------------------------------
def _ceil16(n):
    return (n + 15) // 16 * 16


_off = 0
OFF_B1 = []
for _ in range(5):
    OFF_B1.append(_off)
    _off += _ceil16(28)
OFF_CS1E = _off; _off += _ceil16(120)
OFF_CS1O = _off; _off += _ceil16(120)
OFF_B2 = []
for _ in range(5):
    OFF_B2.append(_off)
    _off += _ceil16(60)
OFF_CS2E = _off; _off += _ceil16(80)
OFF_CS2O = _off; _off += _ceil16(80)
OFF_WP = []
for _ in range(4):
    OFF_WP.append(_off)
    _off += _ceil16(40)
OFF_WFC2 = _off; _off += _ceil16(100)
W_ROWS = _off
del _off


# ---------------------------------------------------------------------------
# Fused Pallas kernel: whole forward pass for TB images per grid step.
# Activation slabs use row index = h*TB + b (interleaved batch layout), so all
# banded-conv / fc1 slices start at multiples of TB (=8) sublanes.
# ---------------------------------------------------------------------------
def _lenet_batched_kernel(x_ref, w_ref, b_ref, o_ref):
    f32 = jnp.float32
    bf16 = jnp.bfloat16

    def dotw(a, off, rows, cols):
        """a (M, rows) @ weight-slab[off:off+rows, :cols]  -> (M, cols) f32."""
        return jnp.dot(a.astype(bf16), w_ref[off:off + rows, 0:cols],
                       preferred_element_type=f32)

    # folded BN biases / FC biases (f32 rows of the bias slab)
    t1 = b_ref[0:1, 0:120]
    t2 = b_ref[1:2, 0:80]
    bf1 = b_ref[2:3, 0:100]
    bf2 = b_ref[3:4, 0:10]

    # ---- conv1 (1->5, k5) + folded bn1 + relu: 5 banded matmuls over kh ----
    # output row ho*TB+b reads input rows (ho+kh)*TB+b  (aligned TB-block slices)
    y1 = dotw(x_ref[0:24 * TB, :], OFF_B1[0], 28, 120)
    for kh in range(1, 5):
        y1 = y1 + dotw(x_ref[kh * TB:(kh + 24) * TB, :], OFF_B1[kh], 28, 120)
    h1 = jnp.maximum(y1 + t1, 0.0)                         # (24*TB,120) @ ho*TB+b

    # ---- maxpool1 2x2: row pairs sit TB rows apart; cols via 0/1 matmuls ----
    m1 = jnp.maximum(h1[0:23 * TB, :], h1[TB:24 * TB, :])  # valid @ rows 2r*TB+b
    p1 = jnp.maximum(dotw(m1, OFF_CS1E, 120, 60),
                     dotw(m1, OFF_CS1O, 120, 60))          # (23*TB,60)

    # ---- conv2 (5->10, k5) + folded bn2 + relu -----------------------------
    # valid p1 rows at 2r*TB+b; conv2 outputs land at rows 2*ho*TB+b
    y2 = dotw(p1[0:15 * TB, :], OFF_B2[0], 60, 80)
    for kh in range(1, 5):
        y2 = y2 + dotw(p1[2 * kh * TB:(2 * kh + 15) * TB, :], OFF_B2[kh], 60, 80)
    h2 = jnp.maximum(y2 + t2, 0.0)                         # (15*TB,80)

    # ---- maxpool2 2x2: row pairs sit 2*TB rows apart ------------------------
    m2 = jnp.maximum(h2[0:13 * TB, :], h2[2 * TB:15 * TB, :])   # valid @ 4q*TB+b
    p2 = jnp.maximum(dotw(m2, OFF_CS2E, 80, 40),
                     dotw(m2, OFF_CS2O, 80, 40))                # (13*TB,40)

    # ---- flatten (torch NCHW .view order folded into Wp) + fc1 + relu ------
    z1 = dotw(p2[0:TB, :], OFF_WP[0], 40, 100)
    for q in range(1, 4):
        z1 = z1 + dotw(p2[4 * q * TB:(4 * q + 1) * TB, :], OFF_WP[q], 40, 100)
    h3 = jnp.maximum(z1 + bf1, 0.0)                        # (TB,100)

    # ---- fc2 + log_softmax -------------------------------------------------
    z = dotw(h3, OFF_WFC2, 100, 10) + bf2                  # (TB,10)
    zmax = jnp.max(z, axis=-1, keepdims=True)
    lse = jnp.log(jnp.sum(jnp.exp(z - zmax), axis=-1, keepdims=True)) + zmax
    o_ref[...] = z - lse


# ---------------------------------------------------------------------------
# One-time parameter preparation: BN folding, band / selection matrices,
# NCHW-flatten permutation, packed into one bf16 weight slab + one f32 bias slab.
# ---------------------------------------------------------------------------
def prepare_params(p):
    f = np.float32
    w1 = np.asarray(p["w1"], f); b1 = np.asarray(p["b1"], f)
    g1 = np.asarray(p["g1"], f); be1 = np.asarray(p["be1"], f)
    m1 = np.asarray(p["m1"], f); v1 = np.asarray(p["v1"], f)
    w2 = np.asarray(p["w2"], f); b2 = np.asarray(p["b2"], f)
    g2 = np.asarray(p["g2"], f); be2 = np.asarray(p["be2"], f)
    m2 = np.asarray(p["m2"], f); v2 = np.asarray(p["v2"], f)
    wfc1 = np.asarray(p["wfc1"], f); bfc1 = np.asarray(p["bfc1"], f)
    wfc2 = np.asarray(p["wfc2"], f); bfc2 = np.asarray(p["bfc2"], f)

    s1 = g1 / np.sqrt(v1 + BN_EPS); t1 = (b1 - m1) * s1 + be1      # (5,)
    s2 = g2 / np.sqrt(v2 + BN_EPS); t2 = (b2 - m2) * s2 + be2      # (10,)

    K = 5
    slab = np.zeros((W_ROWS, 128), f)

    def put(off, mat):
        slab[off:off + mat.shape[0], :mat.shape[1]] = mat

    # conv1 band matrices: B1[kh][wi, wo*5+o] = w1[o,0,kh,wi-wo] * s1[o]
    for kh in range(K):
        B1 = np.zeros((28, 24 * 5), f)
        for wo in range(24):
            for kw in range(K):
                for o in range(5):
                    B1[wo + kw, wo * 5 + o] = w1[o, 0, kh, kw] * s1[o]
        put(OFF_B1[kh], B1)

    # pool1 column-selection matrices (exact 0/1 picks: even / odd columns)
    CS1e = np.zeros((120, 60), f); CS1o = np.zeros((120, 60), f)
    for wq in range(12):
        for o in range(5):
            CS1e[(2 * wq) * 5 + o, wq * 5 + o] = 1.0
            CS1o[(2 * wq + 1) * 5 + o, wq * 5 + o] = 1.0
    put(OFF_CS1E, CS1e); put(OFF_CS1O, CS1o)

    # conv2 band matrices: B2[kh][wi*5+c, wo*10+o] = w2[o,c,kh,wi-wo] * s2[o]
    for kh in range(K):
        B2 = np.zeros((12 * 5, 8 * 10), f)
        for wo in range(8):
            for kw in range(K):
                for c in range(5):
                    for o in range(10):
                        B2[(wo + kw) * 5 + c, wo * 10 + o] = w2[o, c, kh, kw] * s2[o]
        put(OFF_B2[kh], B2)

    # pool2 column-selection matrices
    CS2e = np.zeros((80, 40), f); CS2o = np.zeros((80, 40), f)
    for wq in range(4):
        for o in range(10):
            CS2e[(2 * wq) * 10 + o, wq * 10 + o] = 1.0
            CS2o[(2 * wq + 1) * 10 + o, wq * 10 + o] = 1.0
    put(OFF_CS2E, CS2e); put(OFF_CS2O, CS2o)

    # fc1 with torch's NCHW flatten (flat index = c*16 + ho*4 + wo) folded in:
    # Wp[ho][wo*10+c, j] = wfc1[j, c*16 + ho*4 + wo]
    for ho in range(4):
        Wp = np.zeros((40, 100), f)
        for wo in range(4):
            for c in range(10):
                Wp[wo * 10 + c, :] = wfc1[:, c * 16 + ho * 4 + wo]
        put(OFF_WP[ho], Wp)

    put(OFF_WFC2, np.ascontiguousarray(wfc2.T))                    # (100, 10)

    bias = np.zeros((8, 128), f)
    bias[0, :120] = np.tile(t1, 24)
    bias[1, :80] = np.tile(t2, 8)
    bias[2, :100] = bfc1
    bias[3, :10] = bfc2

    return jnp.asarray(slab, dtype=jnp.bfloat16), jnp.asarray(bias)


# ---------------------------------------------------------------------------
# Forward: one fused pallas_call, TB images per grid step.
# ---------------------------------------------------------------------------
@jax.jit
def lenet_forward(x_nchw, w_slab, b_slab):
    N = x_nchw.shape[0]
    x = x_nchw.reshape(N, 28, 28).astype(jnp.float32)
    nt = -(-N // TB)
    pad = nt * TB - N
    if pad:
        x = jnp.concatenate([x, jnp.zeros((pad, 28, 28), jnp.float32)], axis=0)
    # interleaved batch layout: within tile t, slab row h*TB + b <-> image t*TB+b row h
    xs = x.reshape(nt, TB, 28, 28).transpose(0, 2, 1, 3).reshape(nt * 28 * TB, 28)

    out = pl.pallas_call(
        _lenet_batched_kernel,
        out_shape=jax.ShapeDtypeStruct((nt * TB, 10), jnp.float32),
        grid=(nt,),
        in_specs=[
            pl.BlockSpec((28 * TB, 28), lambda i: (i, 0)),
            pl.BlockSpec(w_slab.shape, lambda i: (0, 0)),
            pl.BlockSpec(b_slab.shape, lambda i: (0, 0)),
        ],
        out_specs=pl.BlockSpec((TB, 10), lambda i: (i, 0)),
        compiler_params=pltpu.CompilerParams(dimension_semantics=("parallel",)),
    )(xs, w_slab, b_slab)
    return out[:N]


# ---------------------------------------------------------------------------
# Pure-JAX reference (NCHW, f32 HIGHEST precision, mirrors the PyTorch module)
# ---------------------------------------------------------------------------
def reference_forward(x, p):
    def conv(x, w, b):
        y = lax.conv_general_dilated(
            x, w, window_strides=(1, 1), padding="VALID",
            dimension_numbers=("NCHW", "OIHW", "NCHW"),
            precision=lax.Precision.HIGHEST)
        return y + b[None, :, None, None]

    def bn(x, g, be, m, v):
        return g[None, :, None, None] * (x - m[None, :, None, None]) / \
            jnp.sqrt(v[None, :, None, None] + BN_EPS) + be[None, :, None, None]

    def pool(x):
        return lax.reduce_window(x, -jnp.inf, lax.max,
                                 (1, 1, 2, 2), (1, 1, 2, 2), "VALID")

    h = jax.nn.relu(bn(conv(x, p["w1"], p["b1"]), p["g1"], p["be1"], p["m1"], p["v1"]))
    h = pool(h)
    h = jax.nn.relu(bn(conv(h, p["w2"], p["b2"]), p["g2"], p["be2"], p["m2"], p["v2"]))
    h = pool(h)
    h = h.reshape(x.shape[0], -1)
    h = jax.nn.relu(jnp.dot(h, p["wfc1"].T, precision=lax.Precision.HIGHEST) + p["bfc1"])
    z = jnp.dot(h, p["wfc2"].T, precision=lax.Precision.HIGHEST) + p["bfc2"]
    return jax.nn.log_softmax(z, axis=1)


# ---------------------------------------------------------------------------
# Deterministic parameter init (PyTorch-like uniform bounds)
# ---------------------------------------------------------------------------
def init_params(key):
    ks = jax.random.split(key, 20)

    def u(k, shape, fan_in):
        b = 1.0 / math.sqrt(fan_in)
        return jax.random.uniform(k, shape, jnp.float32, -b, b)

    p = {}
    p["w1"] = u(ks[0], (5, 1, 5, 5), 1 * 5 * 5)      # conv1 weight (O,I,KH,KW)
    p["b1"] = u(ks[1], (5,), 1 * 5 * 5)
    p["g1"] = 1.0 + 0.1 * jax.random.normal(ks[2], (5,), jnp.float32)
    p["be1"] = 0.1 * jax.random.normal(ks[3], (5,), jnp.float32)
    p["m1"] = 0.05 * jax.random.normal(ks[4], (5,), jnp.float32)
    p["v1"] = jax.random.uniform(ks[5], (5,), jnp.float32, 0.5, 1.5)

    p["w2"] = u(ks[6], (10, 5, 5, 5), 5 * 5 * 5)     # conv2 weight
    p["b2"] = u(ks[7], (10,), 5 * 5 * 5)
    p["g2"] = 1.0 + 0.1 * jax.random.normal(ks[8], (10,), jnp.float32)
    p["be2"] = 0.1 * jax.random.normal(ks[9], (10,), jnp.float32)
    p["m2"] = 0.05 * jax.random.normal(ks[10], (10,), jnp.float32)
    p["v2"] = jax.random.uniform(ks[11], (10,), jnp.float32, 0.5, 1.5)

    p["wfc1"] = u(ks[12], (100, 160), 160)           # fc1 weight (out, in) torch layout
    p["bfc1"] = u(ks[13], (100,), 160)
    p["wfc2"] = u(ks[14], (10, 100), 100)            # fc2 weight
    p["bfc2"] = u(ks[15], (10,), 100)
    return p


if __name__ == "__main__":
    key = jax.random.PRNGKey(0)
    pkey, xkey = jax.random.split(key)
    params = init_params(pkey)
    w_slab, b_slab = prepare_params(params)   # one-time: BN fold, band/selection slabs

    # MNIST-shaped input implied by fc1 (4*4*10): (N, 1, 28, 28), NCHW like PyTorch.
    # N = 16 = 2*TB -> the grid has 2 parallel steps (feeds both v7x TensorCores).
    x = jax.random.normal(xkey, (16, 1, 28, 28), jnp.float32)

    out = jax.block_until_ready(lenet_forward(x, w_slab, b_slab))
    ref = jax.block_until_ready(reference_forward(x, params))

    assert out.shape == (16, 10), out.shape
    # Kernel matmuls are single-pass bf16 (f32 accumulation); compare against the
    # f32 HIGHEST-precision reference with a correspondingly relaxed tolerance.
    np.testing.assert_allclose(np.asarray(out), np.asarray(ref), atol=2e-2, rtol=1e-2)
    print("KERNEL_OK")
</pallas_src>

<mosaic_0001>
module attributes {stable_mosaic.version = 11 : i64} {
  func.func @_lenet_batched_kernel(%arg0: i32, %arg1: memref<224x28xf32, #tpu.memory_space<vmem>>, %arg2: memref<1200x128xbf16, #tpu.memory_space<vmem>>, %arg3: memref<8x128xf32, #tpu.memory_space<vmem>>, %arg4: memref<8x10xf32, #tpu.memory_space<vmem>>) attributes {dimension_semantics = [#tpu.dimension_semantics<parallel>], iteration_bounds = array<i64: 2>, scalar_prefetch = 0 : i64, scratch_operands = 0 : i64, tpu.core_type = #tpu.core_type<tc>, window_params = [{transform_indices = @transform_0, window_bounds = array<i64: 224, 28>}, {pipeline_mode = #tpu.pipeline_mode<synchronous>, transform_indices = @transform_1, window_bounds = array<i64: 1200, 128>}, {pipeline_mode = #tpu.pipeline_mode<synchronous>, transform_indices = @transform_2, window_bounds = array<i64: 8, 128>}, {transform_indices = @transform_3, window_bounds = array<i64: 8, 10>}]} {
    %c0 = arith.constant 0 : index
    %c0_0 = arith.constant 0 : index
    %0 = vector.load %arg3[%c0, %c0_0] : memref<8x128xf32, #tpu.memory_space<vmem>>, vector<1x120xf32>
    %c1 = arith.constant 1 : index
    %c0_1 = arith.constant 0 : index
    %1 = vector.load %arg3[%c1, %c0_1] : memref<8x128xf32, #tpu.memory_space<vmem>>, vector<1x80xf32>
    %c2 = arith.constant 2 : index
    %c0_2 = arith.constant 0 : index
    %2 = vector.load %arg3[%c2, %c0_2] : memref<8x128xf32, #tpu.memory_space<vmem>>, vector<1x100xf32>
    %c3 = arith.constant 3 : index
    %c0_3 = arith.constant 0 : index
    %3 = vector.load %arg3[%c3, %c0_3] : memref<8x128xf32, #tpu.memory_space<vmem>>, vector<1x10xf32>
    %c0_4 = arith.constant 0 : index
    %c0_5 = arith.constant 0 : index
    %4 = vector.load %arg1[%c0_4, %c0_5] : memref<224x28xf32, #tpu.memory_space<vmem>>, vector<192x28xf32>
    %5 = arith.truncf %4 : vector<192x28xf32> to vector<192x28xbf16>
    %c0_6 = arith.constant 0 : index
    %c0_7 = arith.constant 0 : index
    %6 = vector.load %arg2[%c0_6, %c0_7] : memref<1200x128xbf16, #tpu.memory_space<vmem>>, vector<28x120xbf16>
    %cst = arith.constant dense<0.000000e+00> : vector<192x120xf32>
    %7 = tpu.matmul %5, %6, %cst {dimension_numbers = #tpu.dot_dimension_numbers<[1], [0], [0], [1], [0, 0, 1, 1], [], []>} : vector<192x28xbf16>, vector<28x120xbf16>, vector<192x120xf32> -> vector<192x120xf32>
    %c8 = arith.constant 8 : index
    %c0_8 = arith.constant 0 : index
    %8 = vector.load %arg1[%c8, %c0_8] : memref<224x28xf32, #tpu.memory_space<vmem>>, vector<192x28xf32>
    %9 = arith.truncf %8 : vector<192x28xf32> to vector<192x28xbf16>
    %c32 = arith.constant 32 : index
    %c0_9 = arith.constant 0 : index
    %10 = vector.load %arg2[%c32, %c0_9] : memref<1200x128xbf16, #tpu.memory_space<vmem>>, vector<28x120xbf16>
    %cst_10 = arith.constant dense<0.000000e+00> : vector<192x120xf32>
    %11 = tpu.matmul %9, %10, %cst_10 {dimension_numbers = #tpu.dot_dimension_numbers<[1], [0], [0], [1], [0, 0, 1, 1], [], []>} : vector<192x28xbf16>, vector<28x120xbf16>, vector<192x120xf32> -> vector<192x120xf32>
    %12 = arith.addf %7, %11 : vector<192x120xf32>
    %c16 = arith.constant 16 : index
    %c0_11 = arith.constant 0 : index
    %13 = vector.load %arg1[%c16, %c0_11] : memref<224x28xf32, #tpu.memory_space<vmem>>, vector<192x28xf32>
    %14 = arith.truncf %13 : vector<192x28xf32> to vector<192x28xbf16>
    %c64 = arith.constant 64 : index
    %c0_12 = arith.constant 0 : index
    %15 = vector.load %arg2[%c64, %c0_12] : memref<1200x128xbf16, #tpu.memory_space<vmem>>, vector<28x120xbf16>
    %cst_13 = arith.constant dense<0.000000e+00> : vector<192x120xf32>
    %16 = tpu.matmul %14, %15, %cst_13 {dimension_numbers = #tpu.dot_dimension_numbers<[1], [0], [0], [1], [0, 0, 1, 1], [], []>} : vector<192x28xbf16>, vector<28x120xbf16>, vector<192x120xf32> -> vector<192x120xf32>
    %17 = arith.addf %12, %16 : vector<192x120xf32>
    %c24 = arith.constant 24 : index
    %c0_14 = arith.constant 0 : index
    %18 = vector.load %arg1[%c24, %c0_14] : memref<224x28xf32, #tpu.memory_space<vmem>>, vector<192x28xf32>
    %19 = arith.truncf %18 : vector<192x28xf32> to vector<192x28xbf16>
    %c96 = arith.constant 96 : index
    %c0_15 = arith.constant 0 : index
    %20 = vector.load %arg2[%c96, %c0_15] : memref<1200x128xbf16, #tpu.memory_space<vmem>>, vector<28x120xbf16>
    %cst_16 = arith.constant dense<0.000000e+00> : vector<192x120xf32>
    %21 = tpu.matmul %19, %20, %cst_16 {dimension_numbers = #tpu.dot_dimension_numbers<[1], [0], [0], [1], [0, 0, 1, 1], [], []>} : vector<192x28xbf16>, vector<28x120xbf16>, vector<192x120xf32> -> vector<192x120xf32>
    %22 = arith.addf %17, %21 : vector<192x120xf32>
    %c32_17 = arith.constant 32 : index
    %c0_18 = arith.constant 0 : index
    %23 = vector.load %arg1[%c32_17, %c0_18] : memref<224x28xf32, #tpu.memory_space<vmem>>, vector<192x28xf32>
    %24 = arith.truncf %23 : vector<192x28xf32> to vector<192x28xbf16>
    %c128 = arith.constant 128 : index
    %c0_19 = arith.constant 0 : index
    %25 = vector.load %arg2[%c128, %c0_19] : memref<1200x128xbf16, #tpu.memory_space<vmem>>, vector<28x120xbf16>
    %cst_20 = arith.constant dense<0.000000e+00> : vector<192x120xf32>
    %26 = tpu.matmul %24, %25, %cst_20 {dimension_numbers = #tpu.dot_dimension_numbers<[1], [0], [0], [1], [0, 0, 1, 1], [], []>} : vector<192x28xbf16>, vector<28x120xbf16>, vector<192x120xf32> -> vector<192x120xf32>
    %27 = arith.addf %22, %26 : vector<192x120xf32>
    %28 = vector.broadcast %0 : vector<1x120xf32> to vector<192x120xf32>
    %29 = arith.addf %27, %28 : vector<192x120xf32>
    %cst_21 = arith.constant 0.000000e+00 : f32
    %30 = vector.broadcast %cst_21 : f32 to vector<192x120xf32>
    %31 = arith.maximumf %29, %30 : vector<192x120xf32>
    %32 = vector.extract_strided_slice %31 {offsets = [0, 0], sizes = [184, 120], strides = [1, 1]} : vector<192x120xf32> to vector<184x120xf32>
    %33 = vector.extract_strided_slice %31 {offsets = [8, 0], sizes = [184, 120], strides = [1, 1]} : vector<192x120xf32> to vector<184x120xf32>
    %34 = arith.maximumf %32, %33 : vector<184x120xf32>
    %35 = arith.truncf %34 : vector<184x120xf32> to vector<184x120xbf16>
    %c160 = arith.constant 160 : index
    %c0_22 = arith.constant 0 : index
    %36 = vector.load %arg2[%c160, %c0_22] : memref<1200x128xbf16, #tpu.memory_space<vmem>>, vector<120x60xbf16>
    %cst_23 = arith.constant dense<0.000000e+00> : vector<184x60xf32>
    %37 = tpu.matmul %35, %36, %cst_23 {dimension_numbers = #tpu.dot_dimension_numbers<[1], [0], [0], [1], [0, 0, 1, 1], [], []>} : vector<184x120xbf16>, vector<120x60xbf16>, vector<184x60xf32> -> vector<184x60xf32>
    %38 = arith.truncf %34 : vector<184x120xf32> to vector<184x120xbf16>
    %c288 = arith.constant 288 : index
    %c0_24 = arith.constant 0 : index
    %39 = vector.load %arg2[%c288, %c0_24] : memref<1200x128xbf16, #tpu.memory_space<vmem>>, vector<120x60xbf16>
    %cst_25 = arith.constant dense<0.000000e+00> : vector<184x60xf32>
    %40 = tpu.matmul %38, %39, %cst_25 {dimension_numbers = #tpu.dot_dimension_numbers<[1], [0], [0], [1], [0, 0, 1, 1], [], []>} : vector<184x120xbf16>, vector<120x60xbf16>, vector<184x60xf32> -> vector<184x60xf32>
    %41 = arith.maximumf %37, %40 : vector<184x60xf32>
    %42 = vector.extract_strided_slice %41 {offsets = [0, 0], sizes = [120, 60], strides = [1, 1]} : vector<184x60xf32> to vector<120x60xf32>
    %43 = arith.truncf %42 : vector<120x60xf32> to vector<120x60xbf16>
    %c416 = arith.constant 416 : index
    %c0_26 = arith.constant 0 : index
    %44 = vector.load %arg2[%c416, %c0_26] : memref<1200x128xbf16, #tpu.memory_space<vmem>>, vector<60x80xbf16>
    %cst_27 = arith.constant dense<0.000000e+00> : vector<120x80xf32>
    %45 = tpu.matmul %43, %44, %cst_27 {dimension_numbers = #tpu.dot_dimension_numbers<[1], [0], [0], [1], [0, 0, 1, 1], [], []>} : vector<120x60xbf16>, vector<60x80xbf16>, vector<120x80xf32> -> vector<120x80xf32>
    %46 = vector.extract_strided_slice %41 {offsets = [16, 0], sizes = [120, 60], strides = [1, 1]} : vector<184x60xf32> to vector<120x60xf32>
    %47 = arith.truncf %46 : vector<120x60xf32> to vector<120x60xbf16>
    %c480 = arith.constant 480 : index
    %c0_28 = arith.constant 0 : index
    %48 = vector.load %arg2[%c480, %c0_28] : memref<1200x128xbf16, #tpu.memory_space<vmem>>, vector<60x80xbf16>
    %cst_29 = arith.constant dense<0.000000e+00> : vector<120x80xf32>
    %49 = tpu.matmul %47, %48, %cst_29 {dimension_numbers = #tpu.dot_dimension_numbers<[1], [0], [0], [1], [0, 0, 1, 1], [], []>} : vector<120x60xbf16>, vector<60x80xbf16>, vector<120x80xf32> -> vector<120x80xf32>
    %50 = arith.addf %45, %49 : vector<120x80xf32>
    %51 = vector.extract_strided_slice %41 {offsets = [32, 0], sizes = [120, 60], strides = [1, 1]} : vector<184x60xf32> to vector<120x60xf32>
    %52 = arith.truncf %51 : vector<120x60xf32> to vector<120x60xbf16>
    %c544 = arith.constant 544 : index
    %c0_30 = arith.constant 0 : index
    %53 = vector.load %arg2[%c544, %c0_30] : memref<1200x128xbf16, #tpu.memory_space<vmem>>, vector<60x80xbf16>
    %cst_31 = arith.constant dense<0.000000e+00> : vector<120x80xf32>
    %54 = tpu.matmul %52, %53, %cst_31 {dimension_numbers = #tpu.dot_dimension_numbers<[1], [0], [0], [1], [0, 0, 1, 1], [], []>} : vector<120x60xbf16>, vector<60x80xbf16>, vector<120x80xf32> -> vector<120x80xf32>
    %55 = arith.addf %50, %54 : vector<120x80xf32>
    %56 = vector.extract_strided_slice %41 {offsets = [48, 0], sizes = [120, 60], strides = [1, 1]} : vector<184x60xf32> to vector<120x60xf32>
    %57 = arith.truncf %56 : vector<120x60xf32> to vector<120x60xbf16>
    %c608 = arith.constant 608 : index
    %c0_32 = arith.constant 0 : index
    %58 = vector.load %arg2[%c608, %c0_32] : memref<1200x128xbf16, #tpu.memory_space<vmem>>, vector<60x80xbf16>
    %cst_33 = arith.constant dense<0.000000e+00> : vector<120x80xf32>
    %59 = tpu.matmul %57, %58, %cst_33 {dimension_numbers = #tpu.dot_dimension_numbers<[1], [0], [0], [1], [0, 0, 1, 1], [], []>} : vector<120x60xbf16>, vector<60x80xbf16>, vector<120x80xf32> -> vector<120x80xf32>
    %60 = arith.addf %55, %59 : vector<120x80xf32>
    %61 = vector.extract_strided_slice %41 {offsets = [64, 0], sizes = [120, 60], strides = [1, 1]} : vector<184x60xf32> to vector<120x60xf32>
    %62 = arith.truncf %61 : vector<120x60xf32> to vector<120x60xbf16>
    %c672 = arith.constant 672 : index
    %c0_34 = arith.constant 0 : index
    %63 = vector.load %arg2[%c672, %c0_34] : memref<1200x128xbf16, #tpu.memory_space<vmem>>, vector<60x80xbf16>
    %cst_35 = arith.constant dense<0.000000e+00> : vector<120x80xf32>
    %64 = tpu.matmul %62, %63, %cst_35 {dimension_numbers = #tpu.dot_dimension_numbers<[1], [0], [0], [1], [0, 0, 1, 1], [], []>} : vector<120x60xbf16>, vector<60x80xbf16>, vector<120x80xf32> -> vector<120x80xf32>
    %65 = arith.addf %60, %64 : vector<120x80xf32>
    %66 = vector.broadcast %1 : vector<1x80xf32> to vector<120x80xf32>
    %67 = arith.addf %65, %66 : vector<120x80xf32>
    %cst_36 = arith.constant 0.000000e+00 : f32
    %68 = vector.broadcast %cst_36 : f32 to vector<120x80xf32>
    %69 = arith.maximumf %67, %68 : vector<120x80xf32>
    %70 = vector.extract_strided_slice %69 {offsets = [0, 0], sizes = [104, 80], strides = [1, 1]} : vector<120x80xf32> to vector<104x80xf32>
    %71 = vector.extract_strided_slice %69 {offsets = [16, 0], sizes = [104, 80], strides = [1, 1]} : vector<120x80xf32> to vector<104x80xf32>
    %72 = arith.maximumf %70, %71 : vector<104x80xf32>
    %73 = arith.truncf %72 : vector<104x80xf32> to vector<104x80xbf16>
    %c736 = arith.constant 736 : index
    %c0_37 = arith.constant 0 : index
    %74 = vector.load %arg2[%c736, %c0_37] : memref<1200x128xbf16, #tpu.memory_space<vmem>>, vector<80x40xbf16>
    %cst_38 = arith.constant dense<0.000000e+00> : vector<104x40xf32>
    %75 = tpu.matmul %73, %74, %cst_38 {dimension_numbers = #tpu.dot_dimension_numbers<[1], [0], [0], [1], [0, 0, 1, 1], [], []>} : vector<104x80xbf16>, vector<80x40xbf16>, vector<104x40xf32> -> vector<104x40xf32>
    %76 = arith.truncf %72 : vector<104x80xf32> to vector<104x80xbf16>
    %c816 = arith.constant 816 : index
    %c0_39 = arith.constant 0 : index
    %77 = vector.load %arg2[%c816, %c0_39] : memref<1200x128xbf16, #tpu.memory_space<vmem>>, vector<80x40xbf16>
    %cst_40 = arith.constant dense<0.000000e+00> : vector<104x40xf32>
    %78 = tpu.matmul %76, %77, %cst_40 {dimension_numbers = #tpu.dot_dimension_numbers<[1], [0], [0], [1], [0, 0, 1, 1], [], []>} : vector<104x80xbf16>, vector<80x40xbf16>, vector<104x40xf32> -> vector<104x40xf32>
    %79 = arith.maximumf %75, %78 : vector<104x40xf32>
    %80 = vector.extract_strided_slice %79 {offsets = [0, 0], sizes = [8, 40], strides = [1, 1]} : vector<104x40xf32> to vector<8x40xf32>
    %81 = arith.truncf %80 : vector<8x40xf32> to vector<8x40xbf16>
    %c896 = arith.constant 896 : index
    %c0_41 = arith.constant 0 : index
    %82 = vector.load %arg2[%c896, %c0_41] : memref<1200x128xbf16, #tpu.memory_space<vmem>>, vector<40x100xbf16>
    %cst_42 = arith.constant dense<0.000000e+00> : vector<8x100xf32>
    %83 = tpu.matmul %81, %82, %cst_42 {dimension_numbers = #tpu.dot_dimension_numbers<[1], [0], [0], [1], [0, 0, 1, 1], [], []>} : vector<8x40xbf16>, vector<40x100xbf16>, vector<8x100xf32> -> vector<8x100xf32>
    %84 = vector.extract_strided_slice %79 {offsets = [32, 0], sizes = [8, 40], strides = [1, 1]} : vector<104x40xf32> to vector<8x40xf32>
    %85 = arith.truncf %84 : vector<8x40xf32> to vector<8x40xbf16>
    %c944 = arith.constant 944 : index
    %c0_43 = arith.constant 0 : index
    %86 = vector.load %arg2[%c944, %c0_43] : memref<1200x128xbf16, #tpu.memory_space<vmem>>, vector<40x100xbf16>
    %cst_44 = arith.constant dense<0.000000e+00> : vector<8x100xf32>
    %87 = tpu.matmul %85, %86, %cst_44 {dimension_numbers = #tpu.dot_dimension_numbers<[1], [0], [0], [1], [0, 0, 1, 1], [], []>} : vector<8x40xbf16>, vector<40x100xbf16>, vector<8x100xf32> -> vector<8x100xf32>
    %88 = arith.addf %83, %87 : vector<8x100xf32>
    %89 = vector.extract_strided_slice %79 {offsets = [64, 0], sizes = [8, 40], strides = [1, 1]} : vector<104x40xf32> to vector<8x40xf32>
    %90 = arith.truncf %89 : vector<8x40xf32> to vector<8x40xbf16>
    %c992 = arith.constant 992 : index
    %c0_45 = arith.constant 0 : index
    %91 = vector.load %arg2[%c992, %c0_45] : memref<1200x128xbf16, #tpu.memory_space<vmem>>, vector<40x100xbf16>
    %cst_46 = arith.constant dense<0.000000e+00> : vector<8x100xf32>
    %92 = tpu.matmul %90, %91, %cst_46 {dimension_numbers = #tpu.dot_dimension_numbers<[1], [0], [0], [1], [0, 0, 1, 1], [], []>} : vector<8x40xbf16>, vector<40x100xbf16>, vector<8x100xf32> -> vector<8x100xf32>
    %93 = arith.addf %88, %92 : vector<8x100xf32>
    %94 = vector.extract_strided_slice %79 {offsets = [96, 0], sizes = [8, 40], strides = [1, 1]} : vector<104x40xf32> to vector<8x40xf32>
    %95 = arith.truncf %94 : vector<8x40xf32> to vector<8x40xbf16>
    %c1040 = arith.constant 1040 : index
    %c0_47 = arith.constant 0 : index
    %96 = vector.load %arg2[%c1040, %c0_47] : memref<1200x128xbf16, #tpu.memory_space<vmem>>, vector<40x100xbf16>
    %cst_48 = arith.constant dense<0.000000e+00> : vector<8x100xf32>
    %97 = tpu.matmul %95, %96, %cst_48 {dimension_numbers = #tpu.dot_dimension_numbers<[1], [0], [0], [1], [0, 0, 1, 1], [], []>} : vector<8x40xbf16>, vector<40x100xbf16>, vector<8x100xf32> -> vector<8x100xf32>
    %98 = arith.addf %93, %97 : vector<8x100xf32>
    %99 = vector.broadcast %2 : vector<1x100xf32> to vector<8x100xf32>
    %100 = arith.addf %98, %99 : vector<8x100xf32>
    %cst_49 = arith.constant 0.000000e+00 : f32
    %101 = vector.broadcast %cst_49 : f32 to vector<8x100xf32>
    %102 = arith.maximumf %100, %101 : vector<8x100xf32>
    %103 = arith.truncf %102 : vector<8x100xf32> to vector<8x100xbf16>
    %c1088 = arith.constant 1088 : index
    %c0_50 = arith.constant 0 : index
    %104 = vector.load %arg2[%c1088, %c0_50] : memref<1200x128xbf16, #tpu.memory_space<vmem>>, vector<100x10xbf16>
    %cst_51 = arith.constant dense<0.000000e+00> : vector<8x10xf32>
    %105 = tpu.matmul %103, %104, %cst_51 {dimension_numbers = #tpu.dot_dimension_numbers<[1], [0], [0], [1], [0, 0, 1, 1], [], []>} : vector<8x100xbf16>, vector<100x10xbf16>, vector<8x10xf32> -> vector<8x10xf32>
    %106 = vector.broadcast %3 : vector<1x10xf32> to vector<8x10xf32>
    %107 = arith.addf %105, %106 : vector<8x10xf32>
    %cst_52 = arith.constant dense<0xFF800000> : vector<8xf32>
    %108 = vector.multi_reduction <maximumf>, %107, %cst_52 [1] : vector<8x10xf32> to vector<8xf32>
    %109 = vector.shape_cast %108 : vector<8xf32> to vector<8x1xf32>
    %110 = vector.broadcast %109 : vector<8x1xf32> to vector<8x10xf32>
    %111 = arith.subf %107, %110 : vector<8x10xf32>
    %112 = math.exp %111 : vector<8x10xf32>
    %cst_53 = arith.constant dense<0.000000e+00> : vector<8xf32>
    %113 = vector.multi_reduction <add>, %112, %cst_53 [1] : vector<8x10xf32> to vector<8xf32>
    %114 = vector.shape_cast %113 : vector<8xf32> to vector<8x1xf32>
    %115 = math.log %114 : vector<8x1xf32>
    %116 = arith.addf %115, %109 : vector<8x1xf32>
    %117 = vector.broadcast %116 : vector<8x1xf32> to vector<8x10xf32>
    %118 = arith.subf %107, %117 : vector<8x10xf32>
    %c0_54 = arith.constant 0 : index
    %c0_55 = arith.constant 0 : index
    %119 = vector.load %arg4[%c0_54, %c0_55] : memref<8x10xf32, #tpu.memory_space<vmem>>, vector<8x10xf32>
    tpu.vector_store %arg4[%c0_54, %c0_55], %118 {strides = array<i32>} : memref<8x10xf32, #tpu.memory_space<vmem>>, vector<8x10xf32>,
    return
  }
  func.func @transform_0(%arg0: i32) -> (i32, i32) {
    %c0_i32 = arith.constant 0 : i32
    %c0_i32_0 = arith.constant 0 : i32
    return %arg0, %c0_i32 : i32, i32
  }
  func.func @transform_1(%arg0: i32) -> (i32, i32) {
    %c0_i32 = arith.constant 0 : i32
    %c0_i32_0 = arith.constant 0 : i32
    %c0_i32_1 = arith.constant 0 : i32
    return %c0_i32, %c0_i32_0 : i32, i32
  }
  func.func @transform_2(%arg0: i32) -> (i32, i32) {
    %c0_i32 = arith.constant 0 : i32
    %c0_i32_0 = arith.constant 0 : i32
    %c0_i32_1 = arith.constant 0 : i32
    return %c0_i32, %c0_i32_0 : i32, i32
  }
  func.func @transform_3(%arg0: i32) -> (i32, i32) {
    %c0_i32 = arith.constant 0 : i32
    %c0_i32_0 = arith.constant 0 : i32
    return %arg0, %c0_i32 : i32, i32
  }
}

</mosaic_0001>

<bundles_post_ra>
// kernel: lenet_forward.1
= control target key start
LH: loop header
LB: loop body
LE: loop exit
PB: predicated region body
PF: predicated region fallthrough
CT: control target
= control target key end

     0   :  { %8 = vsyncpa [#allocation3], 0  ;;  %s5616_s0 = inlined_call_operand.vmem [shape: f32[448,28], index: 0, kind: input, shape index: {}]   ;;  %s5617_s1 = inlined_call_operand.vmem [shape: bf16[1200,128], index: 1, kind: input, shape index: {}]   ;;  %s5618_s2 = inlined_call_operand.vmem [shape: f32[8,128], index: 2, kind: input, shape index: {}]   ;;  %s5619_s3 = inlined_call_operand.hbm [shape: f32[16,10], index: 3, kind: output, shape index: {}]  }
   0x1   :  { %10 = vsyncpa [#allocation3 + $0x1], 0  ;;  %s4546_s12 = smov 0   ;;  %s4548_s13 = smov 0  }
   0x2   :  { %s4550_s14 = smov 0   ;;  %s4552_s15 = smov 0  }
   0x3 LB: > { %s4567_s16 = sadd.s32 4294967295, %s4521_s15   ;;  %s3400_s17 = sadd.s32 4294967294, %s4521_s15   ;;  %s4521_s15 = sphi %s4552_s15, %s5689_s15   ;;  %s4517_s14 = sphi %s4550_s14, %s5688_s14   ;;  %s4513_s13 = sphi %s4548_s13, %s5687_s13   ;;  %s4509_s12 = sphi %s4546_s12, %s5686_s12  }
   0x4   : > { %s4571_s18 = sadd.s32 1, %s4521_s15   ;;  %s91_s19 = sadd.s32 1, %s4517_s14 }
   0x5   : > { %s88_s20 = ssub.s32 %s4521_s15, %s4571_s18  ;;  %p101_p0 = scmp.ne.s32.totalorder %s4517_s14, %s4513_s13 }
   0x6   : > { %p89_p1 = scmp.eq.s32.totalorder %s88_s20, 0  ;;  %p102_p2 = scmp.eq.s32.totalorder %s4567_s16, 1 }
   0x7   : > { %p107_p3 = scmp.ne.s32.totalorder %s4513_s13, %s4509_s12  ;;  %p108_p4 = scmp.eq.s32.totalorder %s3400_s17, 1 }
   0x8   : > { %s4582_s21 = scalar_select %p89_p1, %s4517_s14, %s91_s19  }
   0x9   : > { %p4584_p5 = por %p102_p2, %p101_p0  ;;  %p4588_p6 = por %p108_p4, %p107_p3 }
   0xa   : > { %p3403_p7 = scmp.ge.s32.totalorder %s4521_s15, 1  ;;  %p141_p8 = scmp.lt.s32.totalorder %s4521_s15, 3 }
   0xc   : > { %p142_p9 = pnand %p3403_p7, %p141_p8 }
   0xe   : > { %145 = sbr.rel (%p142_p9) target bundleno = 1789 (0x6fd), region = 32 }
  0x13   : > { %v4382_v0 = vld [vmem:[%s5617_s1 + $0x18] sm:$0x3f]   ;;  %vm281_vm0 = vcmask 1045504   ;;  %v4383_v1 = vld [vmem:[%s5617_s1 + $0x10] sm:$0xff]   ;;  %s165_s28 = smul.u32 28, %s4567_s16  ;;  %vm244_vm1 = vcmask 228352  }
  0x14   : > { %4328 = vmatprep.subr.msk.bf16.mxu0 %vm281_vm0, %v4382_v0  ;;  %4329 = vmatprep.subr.msk.bf16.mxu1 %vm281_vm0, %v4382_v0  ;;  %v283_v2 = vsel %vm281_vm0, %v4382_v0, 0  ;;  %v4384_v3 = vld [vmem:[%s5617_s1 + $0x28] sm:$0x3f]   ;;  %v4387_v15 = vld [vmem:[%s5617_s1 + $0x20] sm:$0xff]   ;;  %v4388_v28 = vld [vmem:[%s5617_s1 + $0x38] sm:$0x3f]  }
  0x15   : > { %3851 = vmatpush3.bf16.msra.mxu0 %v283_v2  ;;  %4326 = vmatpush3.bf16.msra.mxu1 %v283_v2  ;;  %p166_p10 = scmp.lt.s32.totalorder %s165_s28, 55  ;;  %v4385_v4 = vld [vmem:[%s5617_s1 + $0x8] sm:$0x3f]   ;;  %v681_v14 = vsel %vm281_vm0, %v4384_v3, 0  ;;  %v4386_v23 = vld [vmem:[%s5617_s1] sm:$0xff]   ;;  %v924_v36 = vsel %vm281_vm0, %v4388_v28, 0 }
  0x16   : > { %3852 = vmatprep.subr.bf16.mxu0 %v4383_v1  ;;  %4325 = vmatprep.subr.bf16.mxu1 %v4383_v1  ;;  %v462_v22 = vsel %vm281_vm0, %v4385_v4, 0  ;;  %v4389_v31 = vld [vmem:[%s5617_s1 + $0x48] sm:$0x3f]   ;;  %v4390_v38 = vld [vmem:[%s5617_s1 + $0x30] sm:$0xff]   ;;  %v4391_v62 = vld [vmem:[%s5617_s1 + $0x40] sm:$0xff]   ;;  %vm1506_vm2 = vcmask 1043456  }
  0x17   : > { %s5691_s28 = smov (!%p166_p10, %s165_s28), 55  ;;  %v1167_v37 = vsel %vm281_vm0, %v4389_v31, 0  ;;  %vm1469_vm3 = vcmask 982016   ;;  %vm1901_vm4 = vcmask 490496   ;;  %vm4524_vm5 = vmmov 0   ;;  %s162_s25 = sand.u32 1, %s4513_s13  }
  0x18   : > { %s3405_s6 = sshll.u32 %s5691_s28, 3  ;;  %vm2706_vm6 = vcmask 654336   ;;  %vm2957_vm7 = vcmask 326656   ;;  %vm3268_vm8 = vcmask 1041408   ;;  %vm3264_vm9 = vcmask 818176   ;;  %s3404_s26 = sshll.u32 %s162_s25, 3 }
  0x19   : > { %3853 = vmatpush3.bf16.msra.mxu0 %v4383_v1  ;;  %4327 = vmatpush3.bf16.msra.mxu1 %v4383_v1  ;;  %s4615_s9 = scalar_lea.vmem %s5616_s0, %s3405_s6  ;;  %vm3312_vm10 = vcmask 80896   ;;  %s3629_s27 = sshll.u32 %s4567_s16, 7 }
  0x1a   : > { %4331 = vmatprep.subr.msk.bf16.mxu0 %vm281_vm0, %v4384_v3  ;;  %4330 = vmatprep.subr.msk.bf16.mxu1 %vm281_vm0, %v4385_v4  ;;  %v177_v5 = vld [vmem:[%s4615_s9 + $0x8] sm:$0xff]  ;;  %v178_v6 = vld [vmem:[%s4615_s9 + $0x10] sm:$0xff]  ;;  %v176_v7 = vld [vmem:[%s4615_s9] sm:$0xff]  ;;  %s164_s28 = scalar_lea.vmem [#allocation2], %s3404_s26  ;;  %s3339_s5 = scalar_lea.hbm %s5619_s3, %s3629_s27 }
  0x1b   : > { %v179_v8 = vld [vmem:[%s4615_s9 + $0x18] sm:$0xff]  ;;  %v180_v9 = vld [vmem:[%s4615_s9 + $0x20] sm:$0xff]  ;;  %v217_v10 = vpack.c.bf16 %v178_v6, %v177_v5  ;;  %v4625_v12 = vld [vmem:[%s4615_s9 + $0xa8] sm:$0xff]  ;;  %v200_v20 = vpack.c.bf16 %v177_v5, %v176_v7  ;;  %s3341_s29 = sshll.u32 %s164_s28, 4  ;;  %s3328_s6 = scalar_lea.sflag [#allocation3], %s162_s25  ;;  %s3342_s29 = int_to_ptr.vmem [resolvable:$true] %s3341_s29 }
  0x1c   : > { %v4622_v11 = vpack.c.bf16 %v180_v9, %v179_v8  ;;  %v4628_v13 = vld [vmem:[%s4615_s9 + $0xb0] sm:$0xff]  ;;  %v4636_v16 = vld [vmem:[%s4615_s9 + $0xb8] sm:$0xff]  ;;  %v216_v17 = vld [vmem:[%s4615_s9 + $0xc0] sm:$0xff]  ;;  %v201_v35 = vpack.c.bf16 %v179_v8, %v178_v6  ;;  %s4461_s7 = scalar_lea.vmem %s3342_s29, 128  ;;  %s4525_s8 = smov [#allocation2]  }
  0x1d   : > { %3854 = vmatprep.mubr.msk.bf16.mxu0 %vm244_vm1, %v217_v10  ;;  %v4641_v18 = vpack.c.bf16 %v4628_v13, %v4625_v12  ;;  %v181_v19 = vld [vmem:[%s4615_s9 + $0x28] sm:$0xff]  ;;  %v4645_v21 = vpack.c.bf16 %v216_v17, %v4636_v16  ;;  %v182_v24 = vld [vmem:[%s4615_s9 + $0x30] sm:$0xff]  ;;  %v183_v26 = vld [vmem:[%s4615_s9 + $0x38] sm:$0xff]  ;;  %v211_v1 = vpack.c.bf16 %v4636_v16, %v4628_v13  ;;  %p4462_p11 = scmp.ne.s32.totalorder %s3342_s29, %s4461_s7 }
  0x1e   : > { %3855 = vmatmul.mubr.msk.bf16.vlgmr.msra.gmra.mxu0 %vm244_vm1, %v4622_v11  ;;  %v4656_v25 = vpack.c.bf16 %v182_v24, %v181_v19  ;;  %v184_v27 = vld [vmem:[%s4615_s9 + $0x40] sm:$0xff]  ;;  %v185_v29 = vld [vmem:[%s4615_s9 + $0x48] sm:$0xff]  ;;  %v186_v30 = vld [vmem:[%s4615_s9 + $0x50] sm:$0xff]  ;;  %v4689_v40 = vpack.c.bf16 %v181_v19, %v180_v9  ;;  %v203_v47 = vpack.c.bf16 %v183_v26, %v182_v24 }
  0x1f   : > { %3874 = vmatprep.mubr.msk.bf16.mxu1 %vm244_vm1, %v4641_v18  ;;  %3907 = vmatpush3.bf16.msra.mxu0 %v681_v14  ;;  %v4673_v32 = vpack.c.bf16 %v184_v27, %v183_v26  ;;  %v4675_v33 = vpack.c.bf16 %v186_v30, %v185_v29  ;;  %v4678_v34 = vld [vmem:[%s4615_s9 + $0xc8] sm:$0xff]  ;;  %v187_v41 = vld [vmem:[%s4615_s9 + $0x58] sm:$0xff]  ;;  %v188_v42 = vld [vmem:[%s4615_s9 + $0x60] sm:$0xff]  ;;  %v204_v48 = vpack.c.bf16 %v185_v29, %v184_v27  ;;  %p4463_p12 = pnand %p4462_p11, %p4584_p5 }
  0x20   : > { %3875 = vmatmul.mubr.msk.bf16.vlgmr.msra.gmra.mxu1 %vm244_vm1, %v4645_v21  ;;  %3908 = vmatprep.subr.bf16.mxu0 %v4387_v15  ;;  %v4687_v39 = vpack.c.bf16 %v4678_v34, %v216_v17  ;;  %v189_v43 = vld [vmem:[%s4615_s9 + $0x68] sm:$0xff]  ;;  %v190_v44 = vld [vmem:[%s4615_s9 + $0x70] sm:$0xff]  ;;  %v222_v45 = vpack.c.bf16 %v188_v42, %v187_v41  ;;  %v191_v49 = vld [vmem:[%s4615_s9 + $0x78] sm:$0xff]  ;;  %v205_v55 = vpack.c.bf16 %v187_v41, %v186_v30 }
  0x21   : > { %3879 = vmatpush3.bf16.msra.mxu1 %v462_v22  ;;  %3858 = vmatprep.mubr.msk.bf16.mxu0 %vm244_vm1, %v4656_v25  ;;  %v223_v46 = vpack.c.bf16 %v190_v44, %v189_v43  ;;  %v192_v50 = vld [vmem:[%s4615_s9 + $0x80] sm:$0xff]  ;;  %v193_v51 = vld [vmem:[%s4615_s9 + $0x88] sm:$0xff]  ;;  %v194_v52 = vld [vmem:[%s4615_s9 + $0x90] sm:$0xff]  ;;  %v206_v58 = vpack.c.bf16 %v189_v43, %v188_v42  ;;  %v207_v60 = vpack.c.bf16 %v191_v49, %v190_v44  ;;  %p4464_p13 = pneg %p4463_p12 }
  0x22   : > { %3880 = vmatprep.subr.bf16.mxu1 %v4386_v23  ;;  %3882 = vmatprep.mubr.msk.bf16.mxu1 %vm244_vm1, %v200_v20  ;;  %v224_v53 = vpack.c.bf16 %v192_v50, %v191_v49  ;;  %v225_v54 = vpack.c.bf16 %v194_v52, %v193_v51  ;;  %v195_v56 = vld [vmem:[%s4615_s9 + $0x98] sm:$0xff]  ;;  %v196_v57 = vld [vmem:[%s4615_s9 + $0xa0] sm:$0xff]  ;;  %v208_v61 = vpack.c.bf16 %v193_v51, %v192_v50  ;;  %v859_v2 = vld [vmem:[%s4615_s9 + $0xd0] sm:$0xff] }
  0x23   : > { %3909 = vmatpush3.bf16.msra.mxu0 %v4387_v15  ;;  %v226_v59 = vpack.c.bf16 %v196_v57, %v195_v56  ;;  %v209_v63 = vpack.c.bf16 %v195_v56, %v194_v52  ;;  %v210_v0 = vpack.c.bf16 %v4625_v12, %v196_v57  ;;  %v871_v3 = vpack.c.bf16 %v859_v2, %v4678_v34  ;;  %v1102_v4 = vld [vmem:[%s4615_s9 + $0xd8] sm:$0xff]  ;;  %v4392_v6 = vld [vmem:[%s5617_s1 + $0x88] ss:$0 sps:$4 sm:$0xff]   ;;  %v4394_v10 = vld [vmem:[%s5617_s1 + $0x80] sm:$0xff]   ;;  %s4465_s9 = sshll.u32 %s4525_s8, 4  ;;  %s4466_s9 = int_to_ptr.vmem [resolvable:$false] %s4465_s9 }
  0x24   : > { %4333 = vmatprep.subr.msk.bf16.mxu0 %vm281_vm0, %v4389_v31  ;;  %v1114_v5 = vpack.c.bf16 %v1102_v4, %v859_v2  ;;  %v4393_v7 = vld [vmem:[%s5617_s1 + $0xc8] ss:$0 sps:$4 sm:$0xff]   ;;  %v1508_v8 = vsel %vm1506_vm2, %v4392_v6, 0  ;;  %v4396_v12 = vld [vmem:[%s5617_s1 + $0x78] sm:$0xff]   ;;  %v4398_v14 = vld [vmem:[%s5617_s1 + $0x70] sm:$0xff]   ;;  %s4467_s16 = scalar_lea.vmem %s4466_s9, 256  ;;  %p4468_p0 = scmp.lt.s32.totalorder %s3342_s29, %s4466_s9 }
  0x25   : > { %3881 = vmatpush3.bf16.msra.mxu1 %v4386_v23  ;;  %v1699_v9 = vsel %vm1506_vm2, %v4393_v7, 0  ;;  %v4397_v13 = vld [vmem:[%s5617_s1 + $0xb8] sm:$0xff]   ;;  %v4399_v15 = vld [vmem:[%s5617_s1 + $0xb0] sm:$0xff]   ;;  %v4400_v16 = vld [vmem:[%s5617_s1 + $0x68] sm:$0xff]   ;;  %p4469_p1 = scmp.lt.s32.totalorder %s4467_s16, %s4461_s7 }
  0x26   : > { %3859 = vmatmul.mubr.msk.bf16.gmra.mxu0 %vm244_vm1, %v4673_v32  ;;  %4332 = vmatprep.subr.msk.bf16.mxu1 %vm281_vm0, %v4388_v28  ;;  %v4401_v17 = vld [vmem:[%s5617_s1 + $0xa8] sm:$0xff]   ;;  %v4403_v19 = vld [vmem:[%s5617_s1 + $0xa0] sm:$0xff]   ;;  %v4404_v20 = vld [vmem:[%s5617_s1 + $0x58] sm:$0xff]  }
  0x27   : > { %3862 = vmatprep.mubr.msk.bf16.mxu0 %vm244_vm1, %v4675_v33  ;;  %v4406_v22 = vld [vmem:[%s5617_s1 + $0x50] sm:$0xff]   ;;  %p4470_p2 = por %p4469_p1, %p4468_p0 }
  0x28   : > { %3883 = vmatmul.mubr.msk.bf16.vlgmr.msra.gmra.mxu1 %vm244_vm1, %v201_v35  ;;  %v4407_v23 = vld [vmem:[%s5617_s1 + $0x90] sm:$0xff]  }
  0x29   : > { %3886 = vmatprep.mubr.msk.bf16.mxu1 %vm244_vm1, %v4689_v40  ;;  %3935 = vmatpush3.bf16.msra.mxu1 %v924_v36  ;;  %p4471_p3 = pnand %p4470_p2, %p4464_p13 }
  0x2a   : > { %3936 = vmatprep.subr.bf16.mxu1 %v4390_v38 }
  0x2d   : > { %3937 = vmatpush3.bf16.msra.mxu1 %v4390_v38 }
  0x2e   : > { %3863 = vmatmul.mubr.msk.bf16.gmra.mxu0 %vm244_vm1, %v222_v45  ;;  %4334 = vmatprep.subr.msk.bf16.mxu1 %vm1506_vm2, %v4392_v6 }
  0x2f   : > { %3866 = vmatprep.mubr.msk.bf16.mxu0 %vm244_vm1, %v223_v46 }
  0x30   : > { %3887 = vmatmul.mubr.msk.bf16.gmra.mxu1 %vm244_vm1, %v203_v47 }
  0x31   : > { %3890 = vmatprep.mubr.msk.bf16.mxu1 %vm244_vm1, %v204_v48 }
  0x36   : > { %3867 = vmatmul.mubr.msk.bf16.gmra.mxu0 %vm244_vm1, %v224_v53 }
  0x37   : > { %3870 = vmatprep.mubr.msk.bf16.mxu0 %vm244_vm1, %v225_v54 }
  0x38   : > { %3891 = vmatmul.mubr.msk.bf16.gmra.mxu1 %vm244_vm1, %v205_v55 }
  0x39   : > { %3894 = vmatprep.mubr.msk.bf16.mxu1 %vm244_vm1, %v206_v58 }
  0x3e   : > { %3871 = vmatmul.mubr.msk.bf16.gmra.mxu0 %vm244_vm1, %v226_v59 }
  0x3f   : > { %3910 = vmatprep.mubr.msk.bf16.mxu0 %vm244_vm1, %v201_v35 }
  0x40   : > { %3895 = vmatmul.mubr.msk.bf16.gmra.mxu1 %vm244_vm1, %v207_v60 }
  0x41   : > { %3898 = vmatprep.mubr.msk.bf16.mxu1 %vm244_vm1, %v208_v61 }
  0x46   : > { %3911 = vmatmul.mubr.msk.bf16.vlgmr.msra.gmra.mxu0 %vm244_vm1, %v4689_v40 }
  0x47   : > { %3963 = vmatpush3.bf16.msra.mxu0 %v1167_v37  ;;  %3914 = vmatprep.mubr.msk.bf16.mxu0 %vm244_vm1, %v203_v47 }
  0x48   : > { %3899 = vmatmul.mubr.msk.bf16.gmra.mxu1 %vm244_vm1, %v209_v63  ;;  %3964 = vmatprep.subr.bf16.mxu0 %v4391_v62 }
  0x49   : > { %3902 = vmatprep.mubr.msk.bf16.mxu1 %vm244_vm1, %v210_v0 }
  0x4b   : > { %3965 = vmatpush3.bf16.msra.mxu0 %v4391_v62 }
  0x4c   : > { %4335 = vmatprep.subr.msk.bf16.mxu0 %vm1506_vm2, %v4393_v7 }
  0x4e   : > { %3915 = vmatmul.mubr.msk.bf16.gmra.mxu0 %vm244_vm1, %v204_v48 }
  0x4f   : > { %3918 = vmatprep.mubr.msk.bf16.mxu0 %vm244_vm1, %v205_v55 }
  0x50   : > { %3903 = vmatmul.mubr.msk.bf16.gmra.mxu1 %vm244_vm1, %v211_v1 }
  0x51   : > { %3938 = vmatprep.mubr.msk.bf16.mxu1 %vm244_vm1, %v4622_v11  ;;  %v4395_v11 = vld [vmem:[%s5617_s1 + $0xc0] sm:$0xff]  }
  0x56   : > { %3919 = vmatmul.mubr.msk.bf16.gmra.mxu0 %vm244_vm1, %v206_v58 }
  0x57   : > { %3922 = vmatprep.mubr.msk.bf16.mxu0 %vm244_vm1, %v207_v60 }
  0x58   : > { %3939 = vmatmul.mubr.msk.bf16.vlgmr.msra.gmra.mxu1 %vm244_vm1, %v4656_v25 }
  0x59   : > { %3942 = vmatprep.mubr.msk.bf16.mxu1 %vm244_vm1, %v4673_v32  ;;  %3991 = vmatpush3.bf16.msra.mxu1 %v1508_v8 }
  0x5a   : > { %3992 = vmatprep.subr.bf16.mxu1 %v4394_v10 }
  0x5d   : > { %3993 = vmatpush3.bf16.msra.mxu1 %v4394_v10 }
  0x5e   : > { %3923 = vmatmul.mubr.msk.bf16.gmra.mxu0 %vm244_vm1, %v208_v61  ;;  %3994 = vmatprep.subr.bf16.mxu1 %v4396_v12 }
  0x5f   : > { %3926 = vmatprep.mubr.msk.bf16.mxu0 %vm244_vm1, %v209_v63 }
  0x60   : > { %3943 = vmatmul.mubr.msk.bf16.gmra.mxu1 %vm244_vm1, %v4675_v33 }
  0x61   : > { %3946 = vmatprep.mubr.msk.bf16.mxu1 %vm244_vm1, %v222_v45  ;;  %3995 = vmatpush3.bf16.msra.mxu1 %v4396_v12 }
  0x62   : > { %3996 = vmatprep.subr.bf16.mxu1 %v4398_v14 }
  0x65   : > { %3997 = vmatpush3.bf16.msra.mxu1 %v4398_v14 }
  0x66   : > { %3927 = vmatmul.mubr.msk.bf16.gmra.mxu0 %vm244_vm1, %v210_v0  ;;  %3998 = vmatprep.subr.bf16.mxu1 %v4400_v16 }
  0x67   : > { %3930 = vmatprep.mubr.msk.bf16.mxu0 %vm244_vm1, %v211_v1 }
  0x68   : > { %3947 = vmatmul.mubr.msk.bf16.gmra.mxu1 %vm244_vm1, %v223_v46 }
  0x69   : > { %3950 = vmatprep.mubr.msk.bf16.mxu1 %vm244_vm1, %v224_v53  ;;  %3999 = vmatpush3.bf16.msra.mxu1 %v4400_v16 }
  0x6e   : > { %3931 = vmatmul.mubr.msk.bf16.gmra.mxu0 %vm244_vm1, %v4687_v39 }
  0x6f   : > { %3966 = vmatprep.mubr.msk.bf16.mxu0 %vm244_vm1, %v4689_v40 }
  0x70   : > { %3951 = vmatmul.mubr.msk.bf16.gmra.mxu1 %vm244_vm1, %v225_v54 }
  0x71   : > { %3954 = vmatprep.mubr.msk.bf16.mxu1 %vm244_vm1, %v226_v59 }
  0x76   : > { %3967 = vmatmul.mubr.msk.bf16.vlgmr.msra.gmra.mxu0 %vm244_vm1, %v203_v47  ;;  %v4879_v47 = vld [vmem:[%s5617_s1 + $0x108] sm:$0x3f]  }
  0x77   : > { %3970 = vmatprep.mubr.msk.bf16.mxu0 %vm244_vm1, %v204_v48  ;;  %4031 = vmatpush3.bf16.msra.mxu0 %v1699_v9 }
  0x78   : > { %3955 = vmatmul.mubr.msk.bf16.gmra.mxu1 %vm244_vm1, %v4641_v18  ;;  %4032 = vmatprep.subr.bf16.mxu0 %v4395_v11  ;;  %v4402_v18 = vld [vmem:[%s5617_s1 + $0x60] sm:$0xff]  }
  0x79   : > { %3958 = vmatprep.mubr.msk.bf16.mxu1 %vm244_vm1, %v4645_v21  ;;  %4000 = vmatprep.subr.bf16.mxu1 %v4402_v18  ;;  %v4405_v21 = vld [vmem:[%s5617_s1 + $0x98] sm:$0xff]  }
  0x7a   : > { %4001 = vmatpush3.bf16.msra.mxu1 %v4402_v18 }
  0x7b   : > { %4033 = vmatpush3.bf16.msra.mxu0 %v4395_v11  ;;  %4002 = vmatprep.subr.bf16.mxu1 %v4404_v20 }
  0x7c   : > { %4034 = vmatprep.subr.bf16.mxu0 %v4397_v13 }
  0x7e   : > { %3971 = vmatmul.mubr.msk.bf16.gmra.mxu0 %vm244_vm1, %v205_v55  ;;  %4003 = vmatpush3.bf16.msra.mxu1 %v4404_v20 }
  0x7f   : > { %3974 = vmatprep.mubr.msk.bf16.mxu0 %vm244_vm1, %v206_v58  ;;  %4035 = vmatpush3.bf16.msra.mxu0 %v4397_v13 }
  0x80   : > { %3959 = vmatmul.mubr.msk.bf16.gmra.mxu1 %vm244_vm1, %v871_v3  ;;  %4036 = vmatprep.subr.bf16.mxu0 %v4399_v15 }
  0x81   : > { %4004 = vmatprep.subr.bf16.mxu1 %v4406_v22 }
  0x82   : > { %4005 = vmatpush3.bf16.msra.mxu1 %v4406_v22 }
  0x83   : > { %4037 = vmatpush3.bf16.msra.mxu0 %v4399_v15  ;;  %4336 = vmatprep.subr.msk.bf16.mxu1 %vm281_vm0, %v4879_v47 }
  0x84   : > { %4038 = vmatprep.subr.bf16.mxu0 %v4401_v17 }
  0x86   : > { %3975 = vmatmul.mubr.msk.bf16.gmra.mxu0 %vm244_vm1, %v207_v60 }
  0x87   : > { %3978 = vmatprep.mubr.msk.bf16.mxu0 %vm244_vm1, %v208_v61  ;;  %4039 = vmatpush3.bf16.msra.mxu0 %v4401_v17 }
  0x88   : > { %4040 = vmatprep.subr.bf16.mxu0 %v4403_v19 }
  0x8b   : > { %4041 = vmatpush3.bf16.msra.mxu0 %v4403_v19 }
  0x8c   : > { %4042 = vmatprep.subr.bf16.mxu0 %v4405_v21 }
  0x8e   : > { %3979 = vmatmul.mubr.msk.bf16.gmra.mxu0 %vm244_vm1, %v209_v63 }
  0x8f   : > { %3982 = vmatprep.mubr.msk.bf16.mxu0 %vm244_vm1, %v210_v0  ;;  %4043 = vmatpush3.bf16.msra.mxu0 %v4405_v21 }
  0x90   : > { %4044 = vmatprep.subr.bf16.mxu0 %v4407_v23 }
  0x93   : > { %4045 = vmatpush3.bf16.msra.mxu0 %v4407_v23 }
  0x96   : > { %3983 = vmatmul.mubr.msk.bf16.gmra.mxu0 %vm244_vm1, %v211_v1 }
  0x97   : > { %3986 = vmatprep.mubr.msk.bf16.mxu0 %vm244_vm1, %v4687_v39 }
  0x9e   : > { %3987 = vmatmul.mubr.msk.bf16.gmra.mxu0 %vm244_vm1, %v1114_v5 }
  0xde   : > { %v4830_v24 = vpop.f32.mrf.mxu0 }
  0xe0   : > { %v4832_v25 = vpop.f32.mrf.mxu1  ;;  %v4834_v26 = vpop.f32.mrf.mxu0 }
  0xe1   : > { %5622 = vst [vmem:[#allocation5_spill] sm:$0xff] %v4832_v25 }
  0xe2   : > { %v4836_v27 = vpop.f32.mrf.mxu1  ;;  %v4838_v28 = vpop.f32.mrf.mxu0 }
  0xe3   : > { %5623 = vst [vmem:[#allocation6_spill] sm:$0xff] %v4836_v27 }
  0xe4   : > { %v4840_v29 = vpop.f32.mrf.mxu1  ;;  %v4842_v30 = vpop.f32.mrf.mxu0 }
  0xe5   : > { %5624 = vst [vmem:[#allocation7_spill] sm:$0xff] %v4840_v29 }
  0xe6   : > { %v4844_v31 = vpop.f32.mrf.mxu1  ;;  %v4846_v32 = vpop.f32.mrf.mxu0 }
  0xe7   : > { %5625 = vst [vmem:[#allocation8_spill] sm:$0xff] %v4844_v31 }
  0xe8   : > { %v4848_v33 = vpop.f32.mrf.mxu1  ;;  %v4850_v34 = vpop.f32.mrf.mxu0 }
  0xea   : > { %v4852_v35 = vpop.f32.mrf.mxu1  ;;  %v4854_v36 = vpop.f32.mrf.mxu0 }
  0xec   : > { %v4856_v37 = vpop.f32.mrf.mxu1  ;;  %v4858_v38 = vpop.f32.mrf.mxu0 }
  0xee   : > { %v4860_v39 = vpop.f32.mrf.mxu1  ;;  %v4862_v40 = vpop.f32.mrf.mxu0 }
  0xf0   : > { %v4864_v41 = vpop.f32.mrf.mxu1  ;;  %v4866_v42 = vpop.f32.mrf.mxu0 }
  0xf2   : > { %v4868_v43 = vpop.f32.mrf.mxu1  ;;  %v4870_v44 = vpop.f32.mrf.mxu0 }
  0xf4   : > { %v4872_v45 = vpop.f32.mrf.mxu1  ;;  %v4874_v46 = vpop.f32.mrf.mxu0 }
  0xf6   : > { %v4881_v48 = vpop.f32.mrf.mxu1  ;;  %v4883_v49 = vpop.f32.mrf.mxu0 }
  0xf8   : > { %v4887_v50 = vpop.f32.mrf.mxu1  ;;  %v4889_v51 = vpop.f32.mrf.mxu0 }
  0xfa   : > { %v4891_v52 = vpop.f32.mrf.mxu1  ;;  %v4893_v53 = vpop.f32.mrf.mxu0 }
  0xfb   : > { %5626 = vst [vmem:[#allocation9_spill] sm:$0xff] %v4893_v53 }
  0xfc   : > { %v4895_v54 = vpop.f32.mrf.mxu1  ;;  %v4897_v55 = vpop.f32.mrf.mxu0 }
  0xfd   : > { %5627 = vst [vmem:[#allocation10_spill] sm:$0xff] %v4897_v55 }
  0xfe   : > { %v4899_v56 = vpop.f32.mrf.mxu1  ;;  %v4901_v57 = vpop.f32.mrf.mxu0 }
  0xff   : > { %5628 = vst [vmem:[#allocation11_spill] sm:$0xff] %v4901_v57 }
 0x100   : > { %v4903_v58 = vpop.f32.mrf.mxu1  ;;  %v4905_v59 = vpop.f32.mrf.mxu0 }
 0x101   : > { %5629 = vst [vmem:[#allocation12_spill] sm:$0xff] %v4905_v59 }
 0x102   : > { %v4907_v60 = vpop.f32.mrf.mxu1  ;;  %v4909_v61 = vpop.f32.mrf.mxu0 }
 0x103   : > { %5630 = vst [vmem:[#allocation13_spill] sm:$0xff] %v4909_v61 }
 0x104   : > { %v4911_v62 = vpop.f32.mrf.mxu1  ;;  %v4913_v63 = vpop.f32.mrf.mxu0 }
 0x105   : > { %5631 = vst [vmem:[#allocation14_spill] sm:$0xff] %v4911_v62  ;;  %5632 = vst [vmem:[#allocation15_spill] sm:$0xff] %v4913_v63 }
 0x106   : > { %v4915_v0 = vpop.f32.mrf.mxu1  ;;  %v3912_v1 = vpop.f32.mrf.mxu0 }
 0x107   : > { %5633 = vst [vmem:[#allocation16_spill] sm:$0xff] %v4915_v0 }
 0x108   : > { %v4917_v2 = vpop.f32.mrf.mxu1  ;;  %v717_v3 = vpop.f32.mrf.mxu0 }
 0x109   : > { %5634 = vst [vmem:[#allocation17_spill] sm:$0xff] %v4917_v2 }
 0x10a   : > { %v4919_v4 = vpop.f32.mrf.mxu1  ;;  %v3913_v5 = vpop.f32.mrf.mxu0 }
 0x10b   : > { %5635 = vst [vmem:[#allocation18_spill] sm:$0xff] %v4919_v4 }
 0x10c   : > { %v4921_v6 = vpop.f32.mrf.mxu1  ;;  %v720_v7 = vpop.f32.mrf.mxu0 }
 0x10d   : > { %5636 = vst [vmem:[#allocation19_spill] sm:$0xff] %v4921_v6 }
 0x10e   : > { %v4923_v8 = vpop.f32.mrf.mxu1  ;;  %v3916_v9 = vpop.f32.mrf.mxu0 }
 0x10f   : > { %5637 = vst [vmem:[#allocation20_spill] sm:$0xff] %v4923_v8 }
 0x110   : > { %v4925_v10 = vpop.f32.mrf.mxu1  ;;  %v4927_v11 = vpop.f32.mrf.mxu0 }
 0x111   : > { %5638 = vst [vmem:[#allocation21_spill] sm:$0xff] %v4925_v10 }
 0x112   : > { %v4929_v12 = vpop.f32.mrf.mxu1  ;;  %v4931_v13 = vpop.f32.mrf.mxu0 }
 0x113   : > { %5639 = vst [vmem:[#allocation22_spill] sm:$0xff] %v4929_v12 }
 0x114   : > { %v4933_v14 = vpop.f32.mrf.mxu1  ;;  %v4935_v15 = vpop.f32.mrf.mxu0 }
 0x115   : > { %5640 = vst [vmem:[#allocation23_spill] sm:$0xff] %v4933_v14 }
 0x116   : > { %v4937_v16 = vpop.f32.mrf.mxu1  ;;  %v4939_v17 = vpop.f32.mrf.mxu0 }
 0x117   : > { %5641 = vst [vmem:[#allocation24_spill] sm:$0xff] %v4937_v16 }
 0x118   : > { %v3940_v18 = vpop.f32.mrf.mxu1  ;;  %v4941_v19 = vpop.f32.mrf.mxu0 }
 0x11a   : > { %v960_v20 = vpop.f32.mrf.mxu1  ;;  %v4943_v21 = vpop.f32.mrf.mxu0 }
 0x11c   : > { %v3941_v22 = vpop.f32.mrf.mxu1  ;;  %v4945_v23 = vpop.f32.mrf.mxu0 }
 0x11e   : > { %v963_v31 = vpop.f32.mrf.mxu1  ;;  %v4947_v29 = vpop.f32.mrf.mxu0 }
 0x11f   : > { %5642 = vst [vmem:[#allocation25_spill] sm:$0xff] %v4947_v29 }
 0x120   : > { %v3944_v12 = vpop.f32.mrf.mxu1  ;;  %v4949_v14 = vpop.f32.mrf.mxu0 }
 0x121   : > { %5643 = vst [vmem:[#allocation26_spill] sm:$0xff] %v4949_v14 }
 0x122   : > { %v976_v27 = vpop.f32.mrf.mxu1  ;;  %v4951_v10 = vpop.f32.mrf.mxu0 }
 0x123   : > { %5644 = vst [vmem:[#allocation27_spill] sm:$0xff] %v4951_v10 }
 0x124   : > { %v4953_v16 = vpop.f32.mrf.mxu1  ;;  %v4955_v25 = vpop.f32.mrf.mxu0 }
 0x125   : > { %5645 = vst [vmem:[#allocation28_spill] sm:$0xff] %v4955_v25 }
 0x126   : > { %v4957_v8 = vpop.f32.mrf.mxu1  ;;  %v4959_v63 = vpop.f32.mrf.mxu0 }
 0x127   : > { %5646 = vst [vmem:[#allocation29_spill] sm:$0xff] %v4959_v63  ;;  %v507_v63 = vadd.f32 %v4848_v33, %v4830_v24 }
 0x128   : > { %v4961_v6 = vpop.f32.mrf.mxu1  ;;  %v4963_v61 = vpop.f32.mrf.mxu0 }
 0x129   : > { %5647 = vst [vmem:[#allocation30_spill] sm:$0xff] %v4963_v61  ;;  %v499_v61 = vadd.f32 %v4852_v35, %v4834_v26  ;;  %v814_v62 = vadd.f32 %v3912_v1, %v507_v63  ;;  %v4998_v26 = vld [vmem:[%s5618_s2] ss:$0 sm:$0xff] }
 0x12a   : > { %v4965_v4 = vpop.f32.mrf.mxu1  ;;  %v4967_v59 = vpop.f32.mrf.mxu0 }
 0x12b   : > { %5648 = vst [vmem:[#allocation31_spill] sm:$0xff] %v4967_v59  ;;  %v1057_v14 = vadd.f32 %v3940_v18, %v814_v62 }
 0x12c   : > { %v4969_v2 = vpop.f32.mrf.mxu1  ;;  %v4971_v57 = vpop.f32.mrf.mxu0 }
 0x12d   : > { %5649 = vst [vmem:[#allocation32_spill] sm:$0xff] %v4971_v57  ;;  %v812_v57 = vadd.f32 %v717_v3, %v499_v61 }
 0x12e   : > { %v4973_v10 = vpop.f32.mrf.mxu0  ;;  %v4975_v0 = vpop.f32.mrf.mxu1 }
 0x12f   : > { %5650 = vst [vmem:[#allocation33_spill] sm:$0xff] %v4973_v10  ;;  %5651 = vst [vmem:[#allocation34_spill] sm:$0xff] %v4975_v0  ;;  %v510_v10 = vadd.f32 %v4856_v37, %v4838_v28  ;;  %v1055_v33 = vadd.f32 %v960_v20, %v812_v57  ;;  %v523_v37 = vadd.f32 %v4864_v41, %v4846_v32 }
 0x130   : > { %v4977_v25 = vpop.f32.mrf.mxu0  ;;  %v4985_v59 = vpop.f32.mrf.mxu1  ;;  %v526_v32 = vadd.f32 %v4872_v45, %v4854_v36 }
 0x131   : > { %5652 = vst [vmem:[#allocation35_spill] sm:$0xff] %v4977_v25  ;;  %v502_v25 = vadd.f32 %v4860_v39, %v4842_v30  ;;  %v815_v24 = vadd.f32 %v3913_v5, %v510_v10  ;;  %v818_v57 = vadd.f32 %v3916_v9, %v523_v37 }
 0x132   : > { %v4981_v55 = vpop.f32.mrf.mxu0  ;;  %v4993_v0 = vpop.f32.mrf.mxu1  ;;  %v819_v18 = vadd.f32 %v4931_v13, %v526_v32 }
 0x133   : > { %5653 = vst [vmem:[#allocation36_spill] sm:$0xff] %v4981_v55  ;;  %v813_v63 = vadd.f32 %v720_v7, %v502_v25  ;;  %v1058_v1 = vadd.f32 %v3941_v22, %v815_v24  ;;  %v1061_v41 = vadd.f32 %v3944_v12, %v818_v57 }
 0x134   : > { %v4987_v53 = vpop.f32.mrf.mxu0  ;;  %v5005_v3 = vpop.f32.mrf.mxu1 }
 0x135   : > { %v1056_v62 = vadd.f32 %v963_v31, %v813_v63 }
 0x136   : > { %v3968_v29 = vpop.f32.mrf.mxu0  ;;  %v5016_v22 = vpop.f32.mrf.mxu1 }
 0x137   : > { %v1300_v55 = vadd.f32 %v3968_v29, %v1057_v14  ;;  %v515_v29 = vadd.f32 %v4868_v43, %v4850_v34  ;;  %v518_v14 = vadd.f32 %v4881_v48, %v4858_v38  ;;  %v1062_v38 = vadd.f32 %v4953_v16, %v819_v18 }
 0x138   : > { %v1203_v35 = vpop.f32.mrf.mxu0  ;;  %v5026_v37 = vpop.f32.mrf.mxu1 }
 0x139   : > { %v1298_v28 = vadd.f32 %v1203_v35, %v1055_v33  ;;  %v1328_v30 = vadd.f32 %v4998_v26, %v1300_v55  ;;  %v816_v31 = vadd.f32 %v4927_v11, %v515_v29  ;;  %v817_v36 = vadd.f32 %v4935_v15, %v518_v14 }
 0x13a   : > { %v3969_v61 = vpop.f32.mrf.mxu0  ;;  %v539_v35 = vadd.f32 %v4887_v50, %v4862_v40 }
 0x13b   : > { %v1301_v39 = vadd.f32 %v3969_v61, %v1058_v1  ;;  %v1326_v10 = vadd.f32 %v4998_v26, %v1298_v28  ;;  %v1352_v34 = vmax.f32 %v1328_v30, 0.0  ;;  %v1059_v20 = vadd.f32 %v976_v27, %v816_v31 }
 0x13c   : > { %v1206_v5 = vpop.f32.mrf.mxu0  ;;  %v531_v27 = vadd.f32 %v4891_v52, %v4866_v42  ;;  %v1060_v13 = vadd.f32 %v4957_v8, %v817_v36  ;;  %v822_v15 = vadd.f32 %v4939_v17, %v539_v35  ;;  %v534_v8 = vadd.f32 %v4899_v56, %v4874_v46  ;;  %v5044_v46 = vpop.f32.mrf.mxu1  ;;  %v5656_v36 = vld [vmem:[#allocation26_spill] sm:$0xff] }
 0x13d   : > { %v1329_v25 = vadd.f32 %v4998_v26, %v1301_v39  ;;  %v1299_v7 = vadd.f32 %v1206_v5, %v1056_v62  ;;  %v1350_v45 = vmax.f32 %v1326_v10, 0.0  ;;  %v542_v62 = vadd.f32 %v4895_v54, %v4870_v44 }
 0x13e   : > { %v3972_v55 = vpop.f32.mrf.mxu0  ;;  %v820_v30 = vadd.f32 %v4941_v19, %v531_v27  ;;  %v1065_v17 = vadd.f32 %v4961_v6, %v822_v15  ;;  %v1927_v44 = vsel %vm281_vm0, %v4879_v47, 0  ;;  %v5659_v27 = vld [vmem:[#allocation10_spill] sm:$0xff] }
 0x13f   : > { %v1353_v43 = vmax.f32 %v1329_v25, 0.0  ;;  %v1327_v9 = vadd.f32 %v4998_v26, %v1299_v7  ;;  %v1304_v24 = vadd.f32 %v3972_v55, %v1061_v41  ;;  %v823_v5 = vadd.f32 %v4943_v21, %v542_v62 }
 0x140   : > { %v1219_v33 = vpop.f32.mrf.mxu0  ;;  %v1063_v10 = vadd.f32 %v4965_v4, %v820_v30  ;;  %v555_v21 = vadd.f32 %v4903_v58, %v4883_v49  ;;  %v821_v4 = vadd.f32 %v4945_v23, %v534_v8  ;;  %v547_v41 = vadd.f32 %v4907_v60, %v4889_v51  ;;  %v5655_v23 = vld [vmem:[#allocation25_spill] sm:$0xff]  ;;  %v5661_v30 = vld [vmem:[#allocation27_spill] sm:$0xff] }
 0x141   : > { %v1376_v11 = vmax.f32 %v1352_v34, %v1353_v43  ;;  %v1351_v12 = vmax.f32 %v1327_v9, 0.0  ;;  %v1302_v48 = vadd.f32 %v1219_v33, %v1059_v20  ;;  %v1332_v61 = vadd.f32 %v4998_v26, %v1304_v24  ;;  %v5654_v9 = vld [vmem:[#allocation34_spill] sm:$0xff]  ;;  %v5058_v33 = vpop.f32.mrf.mxu1 }
 0x142   : > { %v3973_v63 = vpop.f32.mrf.mxu0  ;;  %v1066_v55 = vadd.f32 %v4969_v2, %v823_v5  ;;  %v1064_v18 = vadd.f32 %v5654_v9, %v821_v4  ;;  %v826_v24 = vadd.f32 %v5655_v23, %v555_v21  ;;  %v5669_v23 = vld [vmem:[#allocation13_spill] sm:$0xff] }
 0x143   : > { %v1374_v1 = vmax.f32 %v1350_v45, %v1351_v12  ;;  %v1375_v28 = vmax.f32 %v1351_v12, %v1352_v34  ;;  %v1330_v40 = vadd.f32 %v4998_v26, %v1302_v48  ;;  %v1305_v50 = vadd.f32 %v3973_v63, %v1062_v38  ;;  %v5657_v38 = vld [vmem:[#allocation9_spill] sm:$0xff]  ;;  %v5658_v48 = vld [vmem:[#allocation14_spill] sm:$0xff] }
 0x144   : > { %v1222_v16 = vpop.f32.mrf.mxu0  ;;  %v1356_v54 = vmax.f32 %v1332_v61, 0.0  ;;  %v824_v45 = vadd.f32 %v5656_v36, %v547_v41  ;;  %v558_v63 = vadd.f32 %v5658_v48, %v5657_v38 }
 0x145   : > { %v1303_v42 = vadd.f32 %v1222_v16, %v1060_v13  ;;  %v1397_v52 = vpack.c.bf16 %v1375_v28, %v1374_v1  ;;  %v1354_v39 = vmax.f32 %v1330_v40, 0.0  ;;  %v1333_v29 = vadd.f32 %v4998_v26, %v1305_v50  ;;  %v5660_v13 = vld [vmem:[#allocation16_spill] sm:$0xff]  ;;  %v4410_v40 = vld [vmem:[%s5617_s1 + $0xf8] sm:$0xff]  }
 0x146   : > { %v3976_v57 = vpop.f32.mrf.mxu0  ;;  %v550_v1 = vadd.f32 %v5660_v13, %v5659_v27  ;;  %v1069_v28 = vadd.f32 %v4985_v59, %v826_v24  ;;  %v1067_v50 = vadd.f32 %v4993_v0, %v824_v45  ;;  %v1027_v59 = vpop.f32.mrf.mxu1  ;;  %v5663_v0 = vld [vmem:[#allocation11_spill] sm:$0xff] }
 0x147   : > { %v1331_v25 = vadd.f32 %v4998_v26, %v1303_v42  ;;  %4006 = vmatprep.mubr.msk.bf16.mxu1 %vm1469_vm3, %v1397_v52  ;;  %4046 = vmatprep.mubr.msk.bf16.mxu0 %vm1469_vm3, %v1397_v52  ;;  %v1377_v56 = vmax.f32 %v1353_v43, %v1354_v39  ;;  %v1357_v6 = vmax.f32 %v1333_v29, 0.0  ;;  %v1308_v19 = vadd.f32 %v3976_v57, %v1065_v17  ;;  %v4409_v43 = vld [vmem:[%s5617_s1 + $0x100] sm:$0xff]   ;;  %v5662_v29 = vld [vmem:[#allocation28_spill] sm:$0xff] }
 0x148   : > { %v1235_v7 = vpop.f32.mrf.mxu0  ;;  %v827_v42 = vadd.f32 %v5661_v30, %v558_v63  ;;  %v825_v57 = vadd.f32 %v5662_v29, %v550_v1  ;;  %v5670_v24 = vld [vmem:[#allocation19_spill] sm:$0xff]  ;;  %v5676_v30 = vld [vmem:[#allocation21_spill] sm:$0xff] }
 0x149   : > { %v1355_v32 = vmax.f32 %v1331_v25, 0.0  ;;  %v1306_v31 = vadd.f32 %v1235_v7, %v1063_v10  ;;  %v1398_v47 = vpack.c.bf16 %v1377_v56, %v1376_v11  ;;  %v1380_v14 = vmax.f32 %v1356_v54, %v1357_v6  ;;  %v5665_v56 = vld [vmem:[#allocation12_spill] sm:$0xff]  ;;  %v5673_v63 = vld [vmem:[#allocation31_spill] sm:$0xff] }
 0x14a   : > { %v3977_v34 = vpop.f32.mrf.mxu0  ;;  %v1336_v51 = vadd.f32 %v4998_v26, %v1308_v19  ;;  %v1070_v7 = vadd.f32 %v5005_v3, %v827_v42 }
 0x14b   : > { %v1378_v20 = vmax.f32 %v1354_v39, %v1355_v32  ;;  %v1379_v49 = vmax.f32 %v1355_v32, %v1356_v54  ;;  %v1334_v58 = vadd.f32 %v4998_v26, %v1306_v31  ;;  %v1309_v60 = vadd.f32 %v3977_v34, %v1066_v55  ;;  %4007 = vmatmul.mubr.msk.bf16.vlgmr.msra.gmra.mxu1 %vm1469_vm3, %v1398_v47  ;;  %v3960_v34 = vpop.f32.mrf.mxu1 }
 0x14c   : > { %4047 = vmatmul.mubr.msk.bf16.vlgmr.msra.gmra.mxu0 %vm1469_vm3, %v1398_v47  ;;  %v1238_v2 = vpop.f32.mrf.mxu0  ;;  %4071 = vmatpush3.bf16.msra.mxu1 %v1927_v44  ;;  %v1360_v52 = vmax.f32 %v1336_v51, 0.0  ;;  %v5664_v44 = vld [vmem:[#allocation17_spill] sm:$0xff]  ;;  %v1068_v32 = vadd.f32 %v5016_v22, %v825_v57  ;;  %v574_v51 = vadd.f32 %v5670_v24, %v5669_v23 }
 0x14d   : > { %v1399_v11 = vpack.c.bf16 %v1379_v49, %v1378_v20  ;;  %v1358_v12 = vmax.f32 %v1334_v58, 0.0  ;;  %v1307_v35 = vadd.f32 %v1238_v2, %v1064_v18  ;;  %v1337_v15 = vadd.f32 %v4998_v26, %v1309_v60  ;;  %4072 = vmatprep.subr.bf16.mxu1 %v4409_v43  ;;  %v5667_v47 = vld [vmem:[#allocation29_spill] sm:$0xff]  ;;  %v5668_v18 = vld [vmem:[#allocation30_spill] sm:$0xff]  ;;  %v5671_v60 = vld [vmem:[#allocation15_spill] sm:$0xff]  ;;  %v1040_v13 = vpop.f32.mrf.mxu1 }
 0x14e   : > { %v3980_v61 = vpop.f32.mrf.mxu0  ;;  %v571_v54 = vadd.f32 %v5664_v44, %v5663_v0  ;;  %v5672_v2 = vld [vmem:[#allocation20_spill] sm:$0xff]  ;;  %v831_v27 = vadd.f32 %v5673_v63, %v574_v51  ;;  %v5679_v44 = vld [vmem:[#allocation33_spill] sm:$0xff] }
 0x14f   : > { %v1381_v16 = vmax.f32 %v1357_v6, %v1358_v12  ;;  %v1335_v62 = vadd.f32 %v4998_v26, %v1307_v35  ;;  %4010 = vmatprep.mubr.msk.bf16.mxu1 %vm1469_vm3, %v1399_v11  ;;  %4050 = vmatprep.mubr.msk.bf16.mxu0 %vm1469_vm3, %v1399_v11  ;;  %v1361_v8 = vmax.f32 %v1337_v15, 0.0  ;;  %v1312_v17 = vadd.f32 %v3980_v61, %v1069_v28  ;;  %v5666_v6 = vld [vmem:[#allocation18_spill] sm:$0xff] }
 0x150   : > { %v1251_v39 = vpop.f32.mrf.mxu0  ;;  %4073 = vmatpush3.bf16.msra.mxu1 %v4409_v43  ;;  %v563_v19 = vadd.f32 %v5666_v6, %v5665_v56  ;;  %v566_v36 = vadd.f32 %v5672_v2, %v5671_v60  ;;  %v3961_v56 = vpop.f32.mrf.mxu1 }
 0x151   : > { %v1400_v5 = vpack.c.bf16 %v1381_v16, %v1380_v14  ;;  %v1359_v10 = vmax.f32 %v1335_v62, 0.0  ;;  %v1310_v25 = vadd.f32 %v1251_v39, %v1067_v50  ;;  %v1384_v21 = vmax.f32 %v1360_v52, %v1361_v8  ;;  %4074 = vmatprep.subr.bf16.mxu1 %v4410_v40 }
 0x152   : > { %v3981_v4 = vpop.f32.mrf.mxu0  ;;  %v830_v14 = vadd.f32 %v5667_v47, %v571_v54  ;;  %v1340_v43 = vadd.f32 %v4998_v26, %v1312_v17  ;;  %v828_v20 = vadd.f32 %v5668_v18, %v563_v19  ;;  %v1074_v39 = vadd.f32 %v5058_v33, %v831_v27  ;;  %v5683_v47 = vld [vmem:[#allocation8_spill] sm:$0xff]  ;;  %v1043_v24 = vpop.f32.mrf.mxu1 }
 0x153   : > { %v1382_v31 = vmax.f32 %v1358_v12, %v1359_v10  ;;  %v1383_v41 = vmax.f32 %v1359_v10, %v1360_v52  ;;  %v1338_v55 = vadd.f32 %v4998_v26, %v1310_v25  ;;  %v1313_v9 = vadd.f32 %v3981_v4, %v1070_v7  ;;  %4011 = vmatmul.mubr.msk.bf16.gmra.mxu1 %vm1469_vm3, %v1400_v5  ;;  %v5677_v52 = vld [vmem:[#allocation6_spill] sm:$0xff] }
 0x154   : > { %4051 = vmatmul.mubr.msk.bf16.gmra.mxu0 %vm1469_vm3, %v1400_v5  ;;  %v1254_v3 = vpop.f32.mrf.mxu0  ;;  %4075 = vmatpush3.bf16.msra.mxu1 %v4410_v40  ;;  %v1073_v45 = vadd.f32 %v5026_v37, %v830_v14  ;;  %v1071_v35 = vadd.f32 %v5044_v46, %v828_v20  ;;  %v1364_v1 = vmax.f32 %v1340_v43, 0.0  ;;  %v5674_v37 = vld [vmem:[#allocation32_spill] sm:$0xff]  ;;  %v5675_v46 = vld [vmem:[#allocation5_spill] sm:$0xff] }
 0x155   : > { %v1401_v49 = vpack.c.bf16 %v1383_v41, %v1382_v31  ;;  %v1362_v58 = vmax.f32 %v1338_v55, 0.0  ;;  %v1311_v22 = vadd.f32 %v1254_v3, %v1068_v32  ;;  %v1341_v11 = vadd.f32 %v4998_v26, %v1313_v9  ;;  %v5681_v31 = vld [vmem:[#allocation7_spill] sm:$0xff]  ;;  %v5684_v14 = vld [vmem:[#allocation24_spill] sm:$0xff] }
 0x156   : > { %v3984_v12 = vpop.f32.mrf.mxu0  ;;  %v829_v40 = vadd.f32 %v5674_v37, %v566_v36  ;;  %v587_v42 = vadd.f32 %v5676_v30, %v5675_v46  ;;  %v5682_v41 = vld [vmem:[#allocation23_spill] sm:$0xff]  ;;  %v582_v43 = vadd.f32 %v5684_v14, %v5683_v47 }
 0x157   : > { %v1385_v38 = vmax.f32 %v1361_v8, %v1362_v58  ;;  %v1339_v48 = vadd.f32 %v4998_v26, %v1311_v22  ;;  %4014 = vmatprep.mubr.msk.bf16.mxu1 %vm1469_vm3, %v1401_v49  ;;  %4054 = vmatprep.mubr.msk.bf16.mxu0 %vm1469_vm3, %v1401_v49  ;;  %v1365_v28 = vmax.f32 %v1341_v11, 0.0  ;;  %v1316_v15 = vadd.f32 %v3984_v12, %v1073_v45  ;;  %v5678_v8 = vld [vmem:[#allocation22_spill] sm:$0xff]  ;;  %v5685_v22 = vld [vmem:[#allocation36_spill] sm:$0xff] }
 0x158   : > { %v1267_v61 = vpop.f32.mrf.mxu0  ;;  %v579_v17 = vadd.f32 %v5678_v8, %v5677_v52  ;;  %v1072_v5 = vadd.f32 %v1027_v59, %v829_v40  ;;  %v834_v54 = vadd.f32 %v5679_v44, %v587_v42  ;;  %v590_v55 = vadd.f32 %v5682_v41, %v5681_v31  ;;  %v4415_v44 = vld [vmem:[%s5617_s1 + $0x110] sm:$0xff]  }
 0x159   : > { %v1402_v50 = vpack.c.bf16 %v1385_v38, %v1384_v21  ;;  %v1363_v16 = vmax.f32 %v1339_v48, 0.0  ;;  %v1314_v62 = vadd.f32 %v1267_v61, %v1071_v35  ;;  %v1388_v29 = vmax.f32 %v1364_v1, %v1365_v28  ;;  %v5680_v21 = vld [vmem:[#allocation35_spill] sm:$0xff] }
 0x15a   : > { %v3985_v57 = vpop.f32.mrf.mxu0  ;;  %v1344_v6 = vadd.f32 %v4998_v26, %v1316_v15  ;;  %v832_v33 = vadd.f32 %v5680_v21, %v579_v17  ;;  %v1077_v9 = vadd.f32 %v3960_v34, %v834_v54  ;;  %v835_v23 = vadd.f32 %v5685_v22, %v590_v55  ;;  %v4416_v54 = vld [vmem:[%s5617_s1 + $0xe8] sm:$0x3f]  }
 0x15b   : > { %v1386_v10 = vmax.f32 %v1362_v58, %v1363_v16  ;;  %v1387_v25 = vmax.f32 %v1363_v16, %v1364_v1  ;;  %v1342_v0 = vadd.f32 %v4998_v26, %v1314_v62  ;;  %v1317_v19 = vadd.f32 %v3985_v57, %v1074_v39  ;;  %4015 = vmatmul.mubr.msk.bf16.gmra.mxu1 %vm1469_vm3, %v1402_v50  ;;  %v4411_v57 = vld [vmem:[%s5617_s1 + $0x128] sm:$0x3f]  }
 0x15c   : > { %4055 = vmatmul.mubr.msk.bf16.gmra.mxu0 %vm1469_vm3, %v1402_v50  ;;  %v1270_v7 = vpop.f32.mrf.mxu0  ;;  %v1075_v20 = vadd.f32 %v1040_v13, %v832_v33  ;;  %v1368_v51 = vmax.f32 %v1344_v6, 0.0  ;;  %v833_v34 = vadd.f32 %v4987_v53, %v582_v43  ;;  %v1078_v35 = vadd.f32 %v3961_v56, %v835_v23  ;;  %4338 = vmatprep.subr.msk.bf16.mxu0 %vm281_vm0, %v4411_v57  ;;  %v4419_v56 = vld [vmem:[%s5617_s1 + $0x168] sm:$0x3f]  }
 0x15d   : > { %v1403_v4 = vpack.c.bf16 %v1387_v25, %v1386_v10  ;;  %v1366_v32 = vmax.f32 %v1342_v0, 0.0  ;;  %v1315_v59 = vadd.f32 %v1270_v7, %v1072_v5  ;;  %v1345_v3 = vadd.f32 %v4998_v26, %v1317_v19  ;;  %v4413_v10 = vld [vmem:[%s5617_s1 + $0x120] sm:$0xff]   ;;  %v4412_v25 = vld [vmem:[%s5617_s1 + $0xf0] sm:$0xff]   ;;  %v4414_v0 = vld [vmem:[%s5617_s1 + $0x118] sm:$0xff]  }
 0x15e   : > { %v3988_v18 = vpop.f32.mrf.mxu0  ;;  %v1076_v63 = vadd.f32 %v1043_v24, %v833_v34  ;;  %v2193_v5 = vsel %vm281_vm0, %v4411_v57, 0  ;;  %4076 = vmatprep.subr.bf16.mxu1 %v4412_v25  ;;  %v4417_v34 = vld [vmem:[%s5617_s1 + $0xe0] sm:$0xff]  }
 0x15f   : > { %v1389_v49 = vmax.f32 %v1365_v28, %v1366_v32  ;;  %v1343_v58 = vadd.f32 %v4998_v26, %v1315_v59  ;;  %4018 = vmatprep.mubr.msk.bf16.mxu1 %vm1469_vm3, %v1403_v4  ;;  %4058 = vmatprep.mubr.msk.bf16.mxu0 %vm1469_vm3, %v1403_v4  ;;  %v1369_v60 = vmax.f32 %v1345_v3, 0.0  ;;  %v1320_v2 = vadd.f32 %v3988_v18, %v1077_v9 }
 0x160   : > { %v1283_v36 = vpop.f32.mrf.mxu0  ;;  %4119 = vmatpush3.bf16.msra.mxu0 %v2193_v5  ;;  %4077 = vmatpush3.bf16.msra.mxu1 %v4412_v25 }
 0x161   : > { %v1404_v45 = vpack.c.bf16 %v1389_v49, %v1388_v29  ;;  %v1367_v11 = vmax.f32 %v1343_v58, 0.0  ;;  %v1318_v12 = vadd.f32 %v1283_v36, %v1075_v20  ;;  %v1392_v38 = vmax.f32 %v1368_v51, %v1369_v60  ;;  %4120 = vmatprep.subr.bf16.mxu0 %v4413_v10  ;;  %4337 = vmatprep.subr.msk.bf16.mxu1 %vm281_vm0, %v4416_v54 }
 0x162   : > { %v3989_v48 = vpop.f32.mrf.mxu0  ;;  %v1348_v28 = vadd.f32 %v4998_v26, %v1320_v2  ;;  %v2055_v36 = vsel %vm281_vm0, %v4416_v54, 0 }
 0x163   : > { %v1390_v27 = vmax.f32 %v1366_v32, %v1367_v11  ;;  %v1391_v13 = vmax.f32 %v1367_v11, %v1368_v51  ;;  %v1346_v1 = vadd.f32 %v4998_v26, %v1318_v12  ;;  %v1321_v15 = vadd.f32 %v3989_v48, %v1078_v35  ;;  %4019 = vmatmul.mubr.msk.bf16.gmra.mxu1 %vm1469_vm3, %v1404_v45 }
 0x164   : > { %4059 = vmatmul.mubr.msk.bf16.gmra.mxu0 %vm1469_vm3, %v1404_v45  ;;  %v1286_v61 = vpop.f32.mrf.mxu0  ;;  %v1372_v46 = vmax.f32 %v1348_v28, 0.0  ;;  %v2499_v35 = vsel %vm281_vm0, %v4419_v56, 0 }
 0x165   : > { %v1405_v53 = vpack.c.bf16 %v1391_v13, %v1390_v27  ;;  %v1370_v37 = vmax.f32 %v1346_v1, 0.0  ;;  %v1319_v40 = vadd.f32 %v1286_v61, %v1076_v63  ;;  %v1349_v50 = vadd.f32 %v4998_v26, %v1321_v15  ;;  %4121 = vmatpush3.bf16.msra.mxu0 %v4413_v10  ;;  %v4418_v27 = vld [vmem:[%s5617_s1 + $0xd8] sm:$0xff]  }
 0x166   : > { %4122 = vmatprep.subr.bf16.mxu0 %v4414_v0 }
 0x167   : > { %v1393_v16 = vmax.f32 %v1369_v60, %v1370_v37  ;;  %v1347_v62 = vadd.f32 %v4998_v26, %v1319_v40  ;;  %4022 = vmatprep.mubr.msk.bf16.mxu1 %vm1469_vm3, %v1405_v53  ;;  %4062 = vmatprep.mubr.msk.bf16.mxu0 %vm1469_vm3, %v1405_v53  ;;  %v1373_v30 = vmax.f32 %v1349_v50, 0.0 }
 0x169   : > { %v1406_v42 = vpack.c.bf16 %v1393_v16, %v1392_v38  ;;  %v1371_v52 = vmax.f32 %v1347_v62, 0.0  ;;  %v1396_v8 = vmax.f32 %v1372_v46, %v1373_v30  ;;  %4123 = vmatpush3.bf16.msra.mxu0 %v4414_v0  ;;  %v4420_v38 = vld [vmem:[%s5617_s1 + $0x160] sm:$0xff]   ;;  %v4421_v16 = vld [vmem:[%s5617_s1 + $0xd0] sm:$0xff]  }
 0x16a   : > { %4124 = vmatprep.subr.bf16.mxu0 %v4415_v44 }
 0x16b   : > { %v1394_v17 = vmax.f32 %v1370_v37, %v1371_v52  ;;  %v1395_v39 = vmax.f32 %v1371_v52, %v1372_v46  ;;  %4023 = vmatmul.mubr.msk.bf16.gmra.mxu1 %vm1469_vm3, %v1406_v42  ;;  %v1408_v26 = vpack.c.bf16 %v1396_v8, %v1396_v8 }
 0x16c   : > { %4063 = vmatmul.mubr.msk.bf16.gmra.mxu0 %vm1469_vm3, %v1406_v42  ;;  %v4422_v42 = vld [vmem:[%s5617_s1 + $0x158] sm:$0xff]  }
 0x16d   : > { %v1407_v29 = vpack.c.bf16 %v1395_v39, %v1394_v17  ;;  %4125 = vmatpush3.bf16.msra.mxu0 %v4415_v44  ;;  %v4423_v17 = vld [vmem:[%s5617_s1 + $0x150] sm:$0xff]   ;;  %v4424_v39 = vld [vmem:[%s5617_s1 + $0x148] sm:$0x3f]  }
 0x16e   : > { %4340 = vmatprep.subr.msk.bf16.mxu0 %vm281_vm0, %v4419_v56 }
 0x16f   : > { %4026 = vmatprep.mubr.msk.bf16.mxu1 %vm1469_vm3, %v1407_v29  ;;  %4066 = vmatprep.mubr.msk.bf16.mxu0 %vm1469_vm3, %v1407_v29 }
 0x173   : > { %4027 = vmatmul.mubr.msk.bf16.gmra.mxu1 %vm1469_vm3, %v1408_v26 }
 0x174   : > { %4067 = vmatmul.mubr.msk.bf16.gmra.mxu0 %vm1469_vm3, %v1408_v26 }
 0x20b   : > { %v4008_v6 = vpop.f32.mrf.mxu1 }
 0x20c   : > { %v4048_v19 = vpop.f32.mrf.mxu0 }
 0x20d   : > { %v5163_v7 = vpop.f32.mrf.mxu1  ;;  %v1831_v32 = vmax.f32 %v4008_v6, %v4048_v19 }
 0x20e   : > { %v5165_v21 = vpop.f32.mrf.mxu0 }
 0x20f   : > { %v4009_v33 = vpop.f32.mrf.mxu1 }
 0x210   : > { %v4049_v4 = vpop.f32.mrf.mxu0 }
 0x211   : > { %v1832_v59 = vmax.f32 %v4009_v33, %v4049_v4  ;;  %v5167_v31 = vpop.f32.mrf.mxu1 }
 0x212   : > { %v5169_v41 = vpop.f32.mrf.mxu0 }
 0x213   : > { %v5171_v55 = vpack.c.bf16 %v1832_v59, %v1831_v32  ;;  %v4012_v47 = vpop.f32.mrf.mxu1  ;;  %v1830_v59 = vmax.f32 %v5167_v31, %v5169_v41 }
 0x214   : > { %v4052_v14 = vpop.f32.mrf.mxu0 }
 0x215   : > { %4078 = vmatprep.mubr.msk.bf16.mxu1 %vm1901_vm4, %v5171_v55  ;;  %v1560_v43 = vpop.f32.mrf.mxu1  ;;  %v1835_v24 = vmax.f32 %v4012_v47, %v4052_v14 }
 0x216   : > { %v1751_v9 = vpop.f32.mrf.mxu0 }
 0x217   : > { %v4013_v3 = vpop.f32.mrf.mxu1  ;;  %v1833_v22 = vmax.f32 %v1560_v43, %v1751_v9 }
 0x218   : > { %v4053_v18 = vpop.f32.mrf.mxu0 }
 0x219   : > { %v1836_v20 = vmax.f32 %v4013_v3, %v4053_v18  ;;  %v1563_v49 = vpop.f32.mrf.mxu1  ;;  %v1829_v3 = vmax.f32 %v5163_v7, %v5165_v21  ;;  %v2346_v7 = vsel %vm281_vm0, %v4424_v39, 0  ;;  %v4425_v21 = vld [vmem:[%s5617_s1 + $0x140] sm:$0xff]  }
 0x21a   : > { %v1754_v58 = vpop.f32.mrf.mxu0 }
 0x21b   : > { %v1834_v23 = vmax.f32 %v1563_v49, %v1754_v58  ;;  %v4016_v51 = vpop.f32.mrf.mxu1  ;;  %v5181_v45 = vpack.c.bf16 %v1836_v20, %v1835_v24 }
 0x21c   : > { %v4056_v60 = vpop.f32.mrf.mxu0 }
 0x21d   : > { %v5175_v2 = vpack.c.bf16 %v1834_v23, %v1833_v22  ;;  %v1576_v11 = vpop.f32.mrf.mxu1  ;;  %v1839_v53 = vmax.f32 %v4016_v51, %v4056_v60  ;;  %v1852_v22 = vpack.c.bf16 %v1830_v59, %v1829_v3  ;;  %v4426_v60 = vld [vmem:[%s5617_s1 + $0x138] sm:$0xff]  }
 0x21e   : > { %v1767_v12 = vpop.f32.mrf.mxu0 }
 0x21f   : > { %4079 = vmatmul.mubr.msk.bf16.vlgmr.msra.gmra.mxu1 %vm1901_vm4, %v5175_v2  ;;  %4126 = vmatprep.mubr.msk.bf16.mxu0 %vm1901_vm4, %v5175_v2  ;;  %v4017_v48 = vpop.f32.mrf.mxu1  ;;  %v1837_v15 = vmax.f32 %v1576_v11, %v1767_v12 }
 0x220   : > { %4095 = vmatpush3.bf16.msra.mxu1 %v2055_v36  ;;  %v4057_v63 = vpop.f32.mrf.mxu0  ;;  %4082 = vmatprep.mubr.msk.bf16.mxu1 %vm1901_vm4, %v5181_v45 }
 0x221   : > { %4127 = vmatmul.mubr.msk.bf16.vlgmr.msra.gmra.mxu0 %vm1901_vm4, %v5181_v45  ;;  %4096 = vmatprep.subr.bf16.mxu1 %v4417_v34  ;;  %v1840_v13 = vmax.f32 %v4017_v48, %v4057_v63  ;;  %v1579_v1 = vpop.f32.mrf.mxu1 }
 0x222   : > { %v1770_v28 = vpop.f32.mrf.mxu0  ;;  %4167 = vmatpush3.bf16.msra.mxu0 %v2499_v35 }
 0x223   : > { %v1838_v61 = vmax.f32 %v1579_v1, %v1770_v28  ;;  %4168 = vmatprep.subr.bf16.mxu0 %v4420_v38  ;;  %v4020_v37 = vpop.f32.mrf.mxu1  ;;  %v5203_v62 = vpack.c.bf16 %v1840_v13, %v1839_v53  ;;  %v4428_v1 = vld [vmem:[%s5617_s1 + $0x190] sm:$0xff]   ;;  %v4429_v28 = vld [vmem:[%s5617_s1 + $0x1b8] sm:$0xff]   ;;  %v4432_v53 = vld [vmem:[%s5617_s1 + $0x180] sm:$0xff]  }
 0x224   : > { %v4060_v40 = vpop.f32.mrf.mxu0  ;;  %4097 = vmatpush3.bf16.msra.mxu1 %v4417_v34 }
 0x225   : > { %v5198_v50 = vpack.c.bf16 %v1838_v61, %v1837_v15  ;;  %4098 = vmatprep.subr.bf16.mxu1 %v4418_v27  ;;  %v1592_v46 = vpop.f32.mrf.mxu1  ;;  %v5222_v25 = vmax.f32 %v4020_v37, %v4060_v40  ;;  %v4430_v15 = vld [vmem:[%s5617_s1 + $0x188] sm:$0xff]   ;;  %v4431_v61 = vld [vmem:[%s5617_s1 + $0x1b0] sm:$0xff]   ;;  %v4434_v40 = vld [vmem:[%s5617_s1 + $0x178] sm:$0xff]  }
 0x226   : > { %v1783_v30 = vpop.f32.mrf.mxu0  ;;  %4169 = vmatpush3.bf16.msra.mxu0 %v4420_v38  ;;  %v4433_v37 = vld [vmem:[%s5617_s1 + $0x1a8] sm:$0xff]  }
 0x227   : > { %4083 = vmatmul.mubr.msk.bf16.gmra.mxu1 %vm1901_vm4, %v5198_v50  ;;  %4130 = vmatprep.mubr.msk.bf16.mxu0 %vm1901_vm4, %v5198_v50  ;;  %v4021_v52 = vpop.f32.mrf.mxu1  ;;  %v1841_v5 = vmax.f32 %v1592_v46, %v1783_v30  ;;  %v1859_v63 = vpack.c.bf16 %v5222_v25, %v5222_v25 }
 0x228   : > { %v4061_v8 = vpop.f32.mrf.mxu0  ;;  %4086 = vmatprep.mubr.msk.bf16.mxu1 %vm1901_vm4, %v5203_v62  ;;  %4099 = vmatpush3.bf16.msra.mxu1 %v4418_v27 }
 0x229   : > { %4131 = vmatmul.mubr.msk.bf16.gmra.mxu0 %vm1901_vm4, %v5203_v62  ;;  %4100 = vmatprep.subr.bf16.mxu1 %v4421_v16  ;;  %v1844_v29 = vmax.f32 %v4021_v52, %v4061_v8  ;;  %v1595_v26 = vpop.f32.mrf.mxu1 }
 0x22a   : > { %v1786_v57 = vpop.f32.mrf.mxu0  ;;  %4170 = vmatprep.subr.bf16.mxu0 %v4422_v42 }
 0x22b   : > { %v1842_v10 = vmax.f32 %v1595_v26, %v1786_v57  ;;  %4171 = vmatpush3.bf16.msra.mxu0 %v4422_v42  ;;  %v4024_v0 = vpop.f32.mrf.mxu1  ;;  %v5228_v56 = vpack.c.bf16 %v1844_v29, %v5222_v25 }
 0x22c   : > { %v4064_v44 = vpop.f32.mrf.mxu0  ;;  %4101 = vmatpush3.bf16.msra.mxu1 %v4421_v16  ;;  %4172 = vmatprep.subr.bf16.mxu0 %v4423_v17  ;;  %v4436_v16 = vld [vmem:[%s5617_s1 + $0x170] sm:$0xff]  }
 0x22d   : > { %v5224_v54 = vpack.c.bf16 %v1842_v10, %v1841_v5  ;;  %4339 = vmatprep.subr.msk.bf16.mxu1 %vm281_vm0, %v4424_v39  ;;  %v1608_v6 = vpop.f32.mrf.mxu1  ;;  %v1847_v43 = vmax.f32 %v4024_v0, %v4064_v44 }
 0x22e   : > { %v1799_v19 = vpop.f32.mrf.mxu0 }
 0x22f   : > { %4087 = vmatmul.mubr.msk.bf16.gmra.mxu1 %vm1901_vm4, %v5224_v54  ;;  %4134 = vmatprep.mubr.msk.bf16.mxu0 %vm1901_vm4, %v5224_v54  ;;  %v4025_v33 = vpop.f32.mrf.mxu1  ;;  %v1845_v32 = vmax.f32 %v1608_v6, %v1799_v19  ;;  %v2154_v51 = vpack.c.bf16 %v1847_v43, %v1847_v43 }
 0x230   : > { %v4065_v4 = vpop.f32.mrf.mxu0  ;;  %4090 = vmatprep.mubr.msk.bf16.mxu1 %vm1901_vm4, %v5228_v56  ;;  %4173 = vmatpush3.bf16.msra.mxu0 %v4423_v17 }
 0x231   : > { %4135 = vmatmul.mubr.msk.bf16.gmra.mxu0 %vm1901_vm4, %v5228_v56  ;;  %v1611_v47 = vpop.f32.mrf.mxu1  ;;  %v1869_v49 = vpack.c.bf16 %v1845_v32, %v1845_v32  ;;  %v1848_v34 = vmax.f32 %v4025_v33, %v4065_v4 }
 0x232   : > { %v1802_v14 = vpop.f32.mrf.mxu0 }
 0x233   : > { %v1846_v9 = vmax.f32 %v1611_v47, %v1802_v14  ;;  %v4028_v18 = vpop.f32.mrf.mxu1  ;;  %v2306_v35 = vpack.c.bf16 %v1848_v34, %v1847_v43 }
 0x234   : > { %v4068_v20 = vpop.f32.mrf.mxu0 }
 0x235   : > { %v2153_v58 = vpack.c.bf16 %v1846_v9, %v1845_v32  ;;  %v1624_v23 = vpop.f32.mrf.mxu1  ;;  %v1851_v48 = vmax.f32 %v4028_v18, %v4068_v20 }
 0x236   : > { %v1815_v24 = vpop.f32.mrf.mxu0 }
 0x237   : > { %4091 = vmatmul.mubr.msk.bf16.gmra.mxu1 %vm1901_vm4, %v1869_v49  ;;  %4138 = vmatprep.mubr.msk.bf16.mxu0 %vm1901_vm4, %v2153_v58  ;;  %v4029_v31 = vpop.f32.mrf.mxu1  ;;  %v1849_v12 = vmax.f32 %v1624_v23, %v1815_v24  ;;  %v2460_v27 = vpack.c.bf16 %v1851_v48, %v1851_v48 }
 0x238   : > { %v4069_v41 = vpop.f32.mrf.mxu0  ;;  %4102 = vmatprep.mubr.msk.bf16.mxu1 %vm1901_vm4, %v1852_v22 }
 0x239   : > { %4139 = vmatmul.mubr.msk.bf16.gmra.mxu0 %vm1901_vm4, %v2154_v51  ;;  %v2307_v13 = vpack.c.bf16 %v1849_v12, %v1849_v12 }
 0x23a   : > { %4174 = vmatprep.mubr.msk.bf16.mxu0 %vm1901_vm4, %v5198_v50  ;;  %v1818_v36 = vpop.f32.mrf.mxu0 }
 0x23f   : > { %4103 = vmatmul.mubr.msk.bf16.vlgmr.msra.gmra.mxu1 %vm1901_vm4, %v5171_v55  ;;  %v4427_v55 = vld [vmem:[%s5617_s1 + $0x130] sm:$0xff]  }
 0x240   : > { %4143 = vmatpush3.bf16.msra.mxu1 %v2346_v7  ;;  %4106 = vmatprep.mubr.msk.bf16.mxu1 %vm1901_vm4, %v5175_v2  ;;  %v1627_v2 = vpop.f32.mrf.mxu1 }
 0x241   : > { %4175 = vmatmul.mubr.msk.bf16.vlgmr.msra.gmra.mxu0 %vm1901_vm4, %v5203_v62  ;;  %4144 = vmatprep.subr.bf16.mxu1 %v4425_v21  ;;  %v1850_v11 = vmax.f32 %v1627_v2, %v1818_v36 }
 0x242   : > { %4178 = vmatprep.mubr.msk.bf16.mxu0 %vm1901_vm4, %v5224_v54 }
 0x243   : > { %v2459_v38 = vpack.c.bf16 %v1850_v11, %v1849_v12 }
 0x244   : > { %4145 = vmatpush3.bf16.msra.mxu1 %v4425_v21 }
 0x245   : > { %4146 = vmatprep.subr.bf16.mxu1 %v4426_v60 }
 0x247   : > { %4107 = vmatmul.mubr.msk.bf16.gmra.mxu1 %vm1901_vm4, %v5181_v45 }
 0x248   : > { %4110 = vmatprep.mubr.msk.bf16.mxu1 %vm1901_vm4, %v5198_v50  ;;  %4147 = vmatpush3.bf16.msra.mxu1 %v4426_v60 }
 0x249   : > { %4179 = vmatmul.mubr.msk.bf16.gmra.mxu0 %vm1901_vm4, %v5228_v56  ;;  %4148 = vmatprep.subr.bf16.mxu1 %v4427_v55 }
 0x24a   : > { %4182 = vmatprep.mubr.msk.bf16.mxu0 %vm1901_vm4, %v2153_v58 }
 0x24c   : > { %4149 = vmatpush3.bf16.msra.mxu1 %v4427_v55 }
 0x24f   : > { %4111 = vmatmul.mubr.msk.bf16.gmra.mxu1 %vm1901_vm4, %v5203_v62 }
 0x250   : > { %4114 = vmatprep.mubr.msk.bf16.mxu1 %vm1901_vm4, %v5224_v54 }
 0x251   : > { %4183 = vmatmul.mubr.msk.bf16.gmra.mxu0 %vm1901_vm4, %v2306_v35 }
 0x252   : > { %4186 = vmatprep.mubr.msk.bf16.mxu0 %vm1901_vm4, %v2459_v38 }
 0x257   : > { %4115 = vmatmul.mubr.msk.bf16.gmra.mxu1 %vm1901_vm4, %v1859_v63 }
 0x258   : > { %4150 = vmatprep.mubr.msk.bf16.mxu1 %vm1901_vm4, %v5181_v45  ;;  %v4523_v45 = vmov 0.0  }
 0x259   : > { %4187 = vmatmul.mubr.msk.bf16.gmra.mxu0 %vm1901_vm4, %v2460_v27  ;;  %4190 = vmatprep.subr.bf16.mxu1 %v4523_v45 }
 0x25a   : > { %4228 = vmatprep.subr.bf16.mxu0 %v4523_v45  ;;  %4238 = vmatprep.mubr.msk.bf16.mxu0 %vm4524_vm5, %v4523_v45 }
 0x25b   : > { %4229 = vmatpush3.bf16.msra.mxu0 %v4429_v28 }
 0x25c   : > { %4230 = vmatprep.subr.bf16.mxu0 %v4523_v45 }
 0x25f   : > { %4151 = vmatmul.mubr.msk.bf16.vlgmr.msra.gmra.mxu1 %vm1901_vm4, %v5198_v50  ;;  %4231 = vmatpush3.bf16.msra.mxu0 %v4431_v61  ;;  %v4435_v50 = vld [vmem:[%s5617_s1 + $0x1a0] sm:$0xff]  }
 0x260   : > { %4154 = vmatprep.mubr.msk.bf16.mxu1 %vm1901_vm4, %v5203_v62  ;;  %4191 = vmatpush3.bf16.msra.mxu1 %v4428_v1  ;;  %v4437_v62 = vld [vmem:[%s5617_s1 + $0x198] sm:$0xff]  }
 0x261   : > { %4192 = vmatprep.subr.bf16.mxu1 %v4523_v45  ;;  %4232 = vmatprep.subr.bf16.mxu0 %v4523_v45 }
 0x263   : > { %4233 = vmatpush3.bf16.msra.mxu0 %v4433_v37 }
 0x264   : > { %4193 = vmatpush3.bf16.msra.mxu1 %v4430_v15  ;;  %4234 = vmatprep.subr.bf16.mxu0 %v4523_v45 }
 0x265   : > { %4194 = vmatprep.subr.bf16.mxu1 %v4523_v45 }
 0x267   : > { %4155 = vmatmul.mubr.msk.bf16.gmra.mxu1 %vm1901_vm4, %v5224_v54  ;;  %4235 = vmatpush3.bf16.msra.mxu0 %v4435_v50 }
 0x268   : > { %4158 = vmatprep.mubr.msk.bf16.mxu1 %vm1901_vm4, %v5228_v56  ;;  %4195 = vmatpush3.bf16.msra.mxu1 %v4432_v53 }
 0x269   : > { %4196 = vmatprep.subr.bf16.mxu1 %v4523_v45  ;;  %4236 = vmatprep.subr.bf16.mxu0 %v4523_v45 }
 0x26b   : > { %4237 = vmatpush3.bf16.msra.mxu0 %v4437_v62 }
 0x26c   : > { %4197 = vmatpush3.bf16.msra.mxu1 %v4434_v40  ;;  %4286 = vmatprep.subr.bf16.mxu0 %v4523_v45 }
 0x26d   : > { %4198 = vmatprep.subr.bf16.mxu1 %v4523_v45 }
 0x26f   : > { %4159 = vmatmul.mubr.msk.bf16.gmra.mxu1 %vm1901_vm4, %v2153_v58 }
 0x270   : > { %4162 = vmatprep.mubr.msk.bf16.mxu1 %vm1901_vm4, %v2306_v35  ;;  %4199 = vmatpush3.bf16.msra.mxu1 %v4436_v16 }
 0x271   : > { %4266 = vmatprep.subr.bf16.mxu1 %v4523_v45 }
 0x277   : > { %4163 = vmatmul.mubr.msk.bf16.gmra.mxu1 %vm1901_vm4, %v2307_v13 }
 0x278   : > { %4200 = vmatprep.mubr.msk.bf16.mxu1 %vm4524_vm5, %v4523_v45 }
 0x2df   : > { %v4080_v46 = vpop.f32.mrf.mxu1 }
 0x2e1   : > { %v4128_v30 = vpop.f32.mrf.mxu0  ;;  %v1963_v42 = vpop.f32.mrf.mxu1 }
 0x2e3   : > { %v2229_v52 = vpop.f32.mrf.mxu0  ;;  %v5342_v8 = vpop.f32.mrf.mxu1 }
 0x2e5   : > { %v5344_v17 = vpop.f32.mrf.mxu0  ;;  %v5346_v39 = vpop.f32.mrf.mxu1 }
 0x2e7   : > { %v5348_v29 = vpop.f32.mrf.mxu0  ;;  %v4084_v26 = vpop.f32.mrf.mxu1 }
 0x2e9   : > { %v4132_v57 = vpop.f32.mrf.mxu0  ;;  %v1979_v5 = vpop.f32.mrf.mxu1 }
 0x2eb   : > { %v2245_v10 = vpop.f32.mrf.mxu0  ;;  %v4085_v25 = vpop.f32.mrf.mxu1 }
 0x2ed   : > { %v4133_v0 = vpop.f32.mrf.mxu0  ;;  %v5350_v44 = vpop.f32.mrf.mxu1 }
 0x2ef   : > { %v5352_v54 = vpop.f32.mrf.mxu0  ;;  %v4088_v56 = vpop.f32.mrf.mxu1 }
 0x2f1   : > { %v4136_v6 = vpop.f32.mrf.mxu0  ;;  %v1995_v19 = vpop.f32.mrf.mxu1 }
 0x2f3   : > { %v2261_v33 = vpop.f32.mrf.mxu0  ;;  %v4089_v4 = vpop.f32.mrf.mxu1 }
 0x2f5   : > { %v4137_v32 = vpop.f32.mrf.mxu0  ;;  %v1998_v59 = vpop.f32.mrf.mxu1 }
 0x2f7   : > { %v2264_v47 = vpop.f32.mrf.mxu0  ;;  %v4092_v14 = vpop.f32.mrf.mxu1 }
 0x2f9   : > { %v4140_v43 = vpop.f32.mrf.mxu0  ;;  %v2011_v9 = vpop.f32.mrf.mxu1 }
 0x2fb   : > { %v2277_v3 = vpop.f32.mrf.mxu0  ;;  %v4093_v18 = vpop.f32.mrf.mxu1 }
 0x2fd   : > { %v4141_v20 = vpop.f32.mrf.mxu0  ;;  %v2014_v49 = vpop.f32.mrf.mxu1 }
 0x2ff   : > { %v2280_v58 = vpop.f32.mrf.mxu0  ;;  %v4104_v22 = vpop.f32.mrf.mxu1 }
 0x300   : > { %v2100_v23 = vadd.f32 %v4104_v22, %v4080_v46 }
 0x301   : > { %v4176_v24 = vpop.f32.mrf.mxu0  ;;  %v2091_v51 = vpop.f32.mrf.mxu1 }
 0x302   : > { %v2092_v31 = vadd.f32 %v2091_v51, %v1963_v42  ;;  %v2293_v41 = vadd.f32 %v4128_v30, %v2100_v23 }
 0x303   : > { %v2535_v7 = vpop.f32.mrf.mxu0  ;;  %v4105_v21 = vpop.f32.mrf.mxu1 }
 0x304   : > { %v2291_v60 = vadd.f32 %v2229_v52, %v2092_v31  ;;  %v2103_v31 = vadd.f32 %v4105_v21, %v5342_v8 }
 0x305   : > { %v4177_v55 = vpop.f32.mrf.mxu0  ;;  %v2094_v2 = vpop.f32.mrf.mxu1 }
 0x307   : > { %v5354_v36 = vpop.f32.mrf.mxu0  ;;  %v4108_v34 = vpop.f32.mrf.mxu1 }
 0x308   : > { %v2116_v11 = vadd.f32 %v4108_v34, %v4084_v26 }
 0x309   : > { %v5356_v12 = vpop.f32.mrf.mxu0  ;;  %v2107_v35 = vpop.f32.mrf.mxu1 }
 0x30a   : > { %v2108_v38 = vadd.f32 %v2107_v35, %v1979_v5  ;;  %v2297_v48 = vadd.f32 %v4132_v57, %v2116_v11 }
 0x30b   : > { %v5358_v63 = vpop.f32.mrf.mxu0  ;;  %v4109_v27 = vpop.f32.mrf.mxu1 }
 0x30c   : > { %v2119_v13 = vadd.f32 %v4109_v27, %v4085_v25  ;;  %v5360_v1 = vadd.f32 %v2245_v10, %v2108_v38  ;;  %v2294_v27 = vadd.f32 %v5344_v17, %v2103_v31 }
 0x30d   : > { %v5362_v28 = vpop.f32.mrf.mxu0  ;;  %v2110_v15 = vpop.f32.mrf.mxu1 }
 0x30e   : > { %v5364_v61 = vadd.f32 %v4133_v0, %v2119_v13 }
 0x30f   : > { %v5366_v53 = vpop.f32.mrf.mxu0  ;;  %v4112_v37 = vpop.f32.mrf.mxu1 }
 0x310   : > { %v2132_v40 = vadd.f32 %v4112_v37, %v4088_v56 }
 0x311   : > { %v5368_v50 = vpop.f32.mrf.mxu0  ;;  %v2123_v16 = vpop.f32.mrf.mxu1 }
 0x312   : > { %v2124_v62 = vadd.f32 %v2123_v16, %v1995_v19  ;;  %v5370_v46 = vadd.f32 %v4136_v6, %v2132_v40  ;;  %v2111_v40 = vadd.f32 %v2110_v15, %v5350_v44 }
 0x313   : > { %v5372_v30 = vpop.f32.mrf.mxu0  ;;  %v4113_v42 = vpop.f32.mrf.mxu1 }
 0x314   : > { %v2135_v52 = vadd.f32 %v4113_v42, %v4089_v4  ;;  %v5374_v26 = vadd.f32 %v2261_v33, %v2124_v62  ;;  %v2296_v15 = vadd.f32 %v5352_v54, %v2111_v40 }
 0x315   : > { %v5376_v57 = vpop.f32.mrf.mxu0  ;;  %v2126_v5 = vpop.f32.mrf.mxu1 }
 0x316   : > { %v2127_v10 = vadd.f32 %v2126_v5, %v1998_v59  ;;  %v5378_v25 = vadd.f32 %v4137_v32, %v2135_v52 }
 0x317   : > { %v5380_v0 = vpop.f32.mrf.mxu0  ;;  %v4116_v56 = vpop.f32.mrf.mxu1 }
 0x318   : > { %v2148_v18 = vadd.f32 %v4116_v56, %v4092_v14  ;;  %v5382_v20 = vadd.f32 %v2264_v47, %v2127_v10  ;;  %v2095_v47 = vadd.f32 %v2094_v2, %v5346_v39 }
 0x319   : > { %v5384_v6 = vpop.f32.mrf.mxu0  ;;  %v2139_v19 = vpop.f32.mrf.mxu1 }
 0x31a   : > { %v2140_v22 = vadd.f32 %v2139_v19, %v2011_v9  ;;  %v5386_v23 = vadd.f32 %v4140_v43, %v2148_v18  ;;  %v5399_v43 = vld [vmem:[%s5618_s2 + $0x1] ss:$0 sm:$0xff]  ;;  %v2292_v39 = vadd.f32 %v5348_v29, %v2095_v47 }
 0x31b   : > { %v5388_v33 = vpop.f32.mrf.mxu0  ;;  %v4117_v4 = vpop.f32.mrf.mxu1 }
 0x31c   : > { %v5390_v51 = vadd.f32 %v2277_v3, %v2140_v22  ;;  %v4438_v22 = vld [vmem:[%s5617_s1 + $0x1e8] ss:$0 sps:$4 sm:$0xff]  }
 0x31d   : > { %v4189_v59 = vpop.f32.mrf.mxu0  ;;  %v2142_v32 = vpop.f32.mrf.mxu1 }
 0x31e   : > { %v2143_v34 = vadd.f32 %v2142_v32, %v2014_v49 }
 0x31f   : > { %v4152_v11 = vpop.f32.mrf.mxu1 }
 0x320   : > { %v2446_v14 = vadd.f32 %v4152_v11, %v2293_v41  ;;  %v5394_v35 = vadd.f32 %v2280_v58, %v2143_v34 }
 0x321   : > { %v2382_v9 = vpop.f32.mrf.mxu1 }
 0x322   : > { %v2599_v38 = vadd.f32 %v4176_v24, %v2446_v14  ;;  %v2444_v3 = vadd.f32 %v2382_v9, %v2291_v60  ;;  %v2962_v9 = vsel %vm1506_vm2, %v4438_v22, 0 }
 0x323   : > { %v4153_v13 = vpop.f32.mrf.mxu1 }
 0x324   : > { %v2618_v8 = vadd.f32 %v5399_v43, %v2599_v38  ;;  %v2597_v49 = vadd.f32 %v2535_v7, %v2444_v3  ;;  %v2447_v21 = vadd.f32 %v4153_v13, %v2294_v27 }
 0x325   : > { %v2385_v41 = vpop.f32.mrf.mxu1 }
 0x326   : > { %v2616_v58 = vadd.f32 %v5399_v43, %v2597_v49  ;;  %v2600_v2 = vadd.f32 %v4177_v55, %v2447_v21  ;;  %v2445_v37 = vadd.f32 %v2385_v41, %v2292_v39  ;;  %v2633_v16 = vmax.f32 %v2618_v8, 0.0  ;;  %v4439_v39 = vld [vmem:[%s5617_s1 + $0x1e0] sm:$0xff]  }
 0x327   : > { %v4156_v62 = vpop.f32.mrf.mxu1 }
 0x328   : > { %v2631_v24 = vmax.f32 %v2616_v58, 0.0  ;;  %v2619_v60 = vadd.f32 %v5399_v43, %v2600_v2  ;;  %v2598_v17 = vadd.f32 %v5354_v36, %v2445_v37  ;;  %v2450_v42 = vadd.f32 %v4156_v62, %v2297_v48 }
 0x329   : > { %v2398_v52 = vpop.f32.mrf.mxu1 }
 0x32a   : > { %v2646_v7 = vmax.f32 %v2631_v24, %v2633_v16  ;;  %v2617_v5 = vadd.f32 %v5399_v43, %v2598_v17  ;;  %v2603_v29 = vadd.f32 %v5356_v12, %v2450_v42  ;;  %v2448_v10 = vadd.f32 %v2398_v52, %v5360_v1  ;;  %v4440_v12 = vld [vmem:[%s5617_s1 + $0x200] ss:$0 sps:$4 sm:$0xff]  }
 0x32b   : > { %v4157_v55 = vpop.f32.mrf.mxu1  ;;  %v2634_v56 = vmax.f32 %v2619_v60, 0.0 }
 0x32c   : > { %v2632_v18 = vmax.f32 %v2617_v5, 0.0  ;;  %v2451_v44 = vadd.f32 %v4157_v55, %v5364_v61  ;;  %v2622_v19 = vadd.f32 %v5399_v43, %v2603_v29  ;;  %v2601_v36 = vadd.f32 %v5358_v63, %v2448_v10 }
 0x32d   : > { %v2401_v48 = vpop.f32.mrf.mxu1 }
 0x32e   : > { %v2647_v1 = vmax.f32 %v2632_v18, %v2634_v56  ;;  %v2604_v4 = vadd.f32 %v5362_v28, %v2451_v44  ;;  %v2449_v59 = vadd.f32 %v2401_v48, %v2296_v15  ;;  %v2620_v61 = vadd.f32 %v5399_v43, %v2601_v36  ;;  %v2586_v15 = vpop.f32.mrf.mxu0 }
 0x32f   : > { %v4160_v54 = vpop.f32.mrf.mxu1  ;;  %v2637_v11 = vmax.f32 %v2622_v19, 0.0  ;;  %v3090_v28 = vsel %vm1506_vm2, %v4440_v12, 0 }
 0x330   : > { %v2659_v32 = vpack.c.bf16 %v2647_v1, %v2646_v7  ;;  %v5424_v63 = vadd.f32 %v5399_v43, %v2604_v4  ;;  %v2602_v31 = vadd.f32 %v5366_v53, %v2449_v59  ;;  %v2454_v34 = vadd.f32 %v4160_v54, %v5370_v46 }
 0x331   : > { %v2635_v47 = vmax.f32 %v2620_v61, 0.0  ;;  %v2414_v14 = vpop.f32.mrf.mxu1 }
 0x332   : > { %v2621_v38 = vadd.f32 %v5399_v43, %v2602_v31  ;;  %v2607_v3 = vadd.f32 %v5368_v50, %v2454_v34  ;;  %v2452_v27 = vadd.f32 %v2414_v14, %v5374_v26  ;;  %4201 = vmatmul.mubr.msk.bf16.vlgmr.msra.gmra.mxu1 %vm2706_vm6, %v2659_v32  ;;  %4239 = vmatmul.mubr.msk.bf16.vlgmr.msra.gmra.mxu0 %vm2706_vm6, %v2659_v32  ;;  %v2638_v46 = vmax.f32 %v5424_v63, 0.0  ;;  %v4441_v63 = vld [vmem:[%s5617_s1 + $0x1d8] sm:$0xff]   ;;  %v4446_v34 = vld [vmem:[%s5617_s1 + $0x1f0] sm:$0xff]  }
 0x333   : > { %v2648_v53 = vmax.f32 %v2633_v16, %v2635_v47  ;;  %v2650_v13 = vmax.f32 %v2635_v47, %v2637_v11  ;;  %v4161_v8 = vpop.f32.mrf.mxu1  ;;  %4204 = vmatprep.mubr.msk.bf16.mxu1 %vm4524_vm5, %v4523_v45  ;;  %4242 = vmatprep.mubr.msk.bf16.mxu0 %vm4524_vm5, %v4523_v45  ;;  %v4442_v31 = vld [vmem:[%s5617_s1 + $0x1f8] sm:$0xff]  }
 0x334   : > { %v2636_v49 = vmax.f32 %v2621_v38, 0.0  ;;  %v2626_v50 = vadd.f32 %v5399_v43, %v2607_v3  ;;  %v2605_v26 = vadd.f32 %v5372_v30, %v2452_v27  ;;  %v2455_v21 = vadd.f32 %v4161_v8, %v5378_v25  ;;  %4267 = vmatpush3.bf16.msra.mxu1 %v2962_v9  ;;  %4287 = vmatpush3.bf16.msra.mxu0 %v3090_v28 }
 0x335   : > { %v2417_v41 = vpop.f32.mrf.mxu1  ;;  %4268 = vmatprep.subr.bf16.mxu1 %v4523_v45  ;;  %4288 = vmatprep.subr.bf16.mxu0 %v4523_v45 }
 0x336   : > { %v2649_v58 = vmax.f32 %v2634_v56, %v2636_v49  ;;  %v2651_v2 = vmax.f32 %v2636_v49, %v2638_v46  ;;  %v2624_v37 = vadd.f32 %v5399_v43, %v2605_v26  ;;  %v2641_v40 = vmax.f32 %v2626_v50, 0.0 }
 0x337   : > { %v2608_v30 = vadd.f32 %v5376_v57, %v2455_v21  ;;  %v2453_v25 = vadd.f32 %v2417_v41, %v5382_v20  ;;  %v4164_v16 = vpop.f32.mrf.mxu1  ;;  %v4443_v41 = vld [vmem:[%s5617_s1 + $0x1d0] ss:$0 sps:$4 sm:$0xff]  }
 0x338   : > { %v2660_v62 = vpack.c.bf16 %v2649_v58, %v2648_v53  ;;  %v2661_v24 = vpack.c.bf16 %v2651_v2, %v2650_v13  ;;  %v2639_v60 = vmax.f32 %v2624_v37, 0.0  ;;  %v2458_v17 = vadd.f32 %v4164_v16, %v5386_v23  ;;  %4269 = vmatpush3.bf16.msra.mxu1 %v4439_v39  ;;  %4289 = vmatpush3.bf16.msra.mxu0 %v4442_v31 }
 0x339   : > { %v2627_v42 = vadd.f32 %v5399_v43, %v2608_v30  ;;  %v2606_v52 = vadd.f32 %v5380_v0, %v2453_v25  ;;  %v2430_v7 = vpop.f32.mrf.mxu1  ;;  %4270 = vmatprep.subr.bf16.mxu1 %v4523_v45  ;;  %4290 = vmatprep.subr.bf16.mxu0 %v4523_v45  ;;  %v3023_v16 = vsel %vm1506_vm2, %v4443_v41, 0 }
 0x33a   : > { %v2652_v5 = vmax.f32 %v2637_v11, %v2639_v60  ;;  %v2654_v29 = vmax.f32 %v2639_v60, %v2641_v40  ;;  %v2611_v57 = vadd.f32 %v5384_v6, %v2458_v17  ;;  %v2456_v20 = vadd.f32 %v2430_v7, %v5390_v51  ;;  %4205 = vmatmul.mubr.msk.bf16.gmra.mxu1 %vm2706_vm6, %v2660_v62  ;;  %v4444_v17 = vld [vmem:[%s5617_s1 + $0x1c8] sm:$0xff]  }
 0x33b   : > { %v2625_v10 = vadd.f32 %v5399_v43, %v2606_v52  ;;  %4243 = vmatmul.mubr.msk.bf16.gmra.mxu0 %vm2706_vm6, %v2660_v62  ;;  %v4165_v23 = vpop.f32.mrf.mxu1  ;;  %4208 = vmatprep.mubr.msk.bf16.mxu1 %vm4524_vm5, %v4523_v45  ;;  %v2642_v6 = vmax.f32 %v2627_v42, 0.0 }
 0x33c   : > { %v2630_v0 = vadd.f32 %v5399_v43, %v2611_v57  ;;  %v2609_v55 = vadd.f32 %v5388_v33, %v2456_v20  ;;  %4246 = vmatprep.mubr.msk.bf16.mxu0 %vm4524_vm5, %v4523_v45  ;;  %4271 = vmatpush3.bf16.msra.mxu1 %v4441_v63 }
 0x33d   : > { %v2640_v56 = vmax.f32 %v2625_v10, 0.0  ;;  %v2433_v51 = vpop.f32.mrf.mxu1  ;;  %4276 = vmatprep.subr.bf16.mxu1 %v4523_v45  ;;  %4291 = vmatpush3.bf16.msra.mxu0 %v4446_v34  ;;  %v4447_v10 = vld [vmem:[%s5617_s1 + $0x218] ss:$0 sps:$4 sm:$0xff]  }
 0x33e   : > { %v2628_v18 = vadd.f32 %v5399_v43, %v2609_v55  ;;  %v2457_v44 = vadd.f32 %v2433_v51, %v5394_v35  ;;  %v2645_v48 = vmax.f32 %v2630_v0, 0.0  ;;  %4306 = vmatprep.subr.bf16.mxu0 %v4523_v45  ;;  %v3158_v51 = vsel %vm1506_vm2, %v4447_v10, 0 }
 0x33f   : > { %v2653_v19 = vmax.f32 %v2638_v46, %v2640_v56  ;;  %v2655_v36 = vmax.f32 %v2640_v56, %v2642_v6 }
 0x340   : > { %v2643_v22 = vmax.f32 %v2628_v18, 0.0  ;;  %v2610_v12 = vadd.f32 %v2586_v15, %v2457_v44 }
 0x341   : > { %v2662_v1 = vpack.c.bf16 %v2653_v19, %v2652_v5  ;;  %v2663_v4 = vpack.c.bf16 %v2655_v36, %v2654_v29  ;;  %v4445_v29 = vld [vmem:[%s5617_s1 + $0x1c0] sm:$0xff]   ;;  %v4448_v36 = vld [vmem:[%s5617_s1 + $0x210] sm:$0xff]  }
 0x342   : > { %v2656_v59 = vmax.f32 %v2641_v40, %v2643_v22  ;;  %v2658_v33 = vmax.f32 %v2643_v22, %v2645_v48  ;;  %v2629_v61 = vadd.f32 %v5399_v43, %v2610_v12  ;;  %4209 = vmatmul.mubr.msk.bf16.gmra.mxu1 %vm2706_vm6, %v2661_v24 }
 0x343   : > { %4247 = vmatmul.mubr.msk.bf16.gmra.mxu0 %vm2706_vm6, %v2661_v24  ;;  %4212 = vmatprep.mubr.msk.bf16.mxu1 %vm4524_vm5, %v4523_v45 }
 0x344   : > { %v2644_v35 = vmax.f32 %v2629_v61, 0.0  ;;  %4250 = vmatprep.mubr.msk.bf16.mxu0 %vm4524_vm5, %v4523_v45  ;;  %v2665_v43 = vpack.c.bf16 %v2658_v33, %v2658_v33 }
 0x346   : > { %v2657_v54 = vmax.f32 %v2642_v6, %v2644_v35 }
 0x348   : > { %v2664_v32 = vpack.c.bf16 %v2657_v54, %v2656_v59  ;;  %v4449_v59 = vld [vmem:[%s5617_s1 + $0x208] sm:$0xff]  }
 0x34a   : > { %4213 = vmatmul.mubr.msk.bf16.gmra.mxu1 %vm2706_vm6, %v2662_v1 }
 0x34b   : > { %4251 = vmatmul.mubr.msk.bf16.gmra.mxu0 %vm2706_vm6, %v2662_v1  ;;  %4216 = vmatprep.mubr.msk.bf16.mxu1 %vm4524_vm5, %v4523_v45 }
 0x34c   : > { %4254 = vmatprep.mubr.msk.bf16.mxu0 %vm4524_vm5, %v4523_v45 }
 0x352   : > { %4217 = vmatmul.mubr.msk.bf16.gmra.mxu1 %vm2706_vm6, %v2663_v4 }
 0x353   : > { %4255 = vmatmul.mubr.msk.bf16.gmra.mxu0 %vm2706_vm6, %v2663_v4  ;;  %4220 = vmatprep.mubr.msk.bf16.mxu1 %vm4524_vm5, %v4523_v45 }
 0x354   : > { %4258 = vmatprep.mubr.msk.bf16.mxu0 %vm4524_vm5, %v4523_v45 }
 0x35a   : > { %4221 = vmatmul.mubr.msk.bf16.gmra.mxu1 %vm2706_vm6, %v2664_v32 }
 0x35b   : > { %4259 = vmatmul.mubr.msk.bf16.gmra.mxu0 %vm2706_vm6, %v2664_v32  ;;  %4224 = vmatprep.mubr.msk.bf16.mxu1 %vm4524_vm5, %v4523_v45 }
 0x35c   : > { %4262 = vmatprep.mubr.msk.bf16.mxu0 %vm4524_vm5, %v4523_v45 }
 0x362   : > { %4225 = vmatmul.mubr.msk.bf16.gmra.mxu1 %vm2706_vm6, %v2665_v43 }
 0x363   : > { %4263 = vmatmul.mubr.msk.bf16.gmra.mxu0 %vm2706_vm6, %v2665_v43  ;;  %4272 = vmatprep.mubr.msk.bf16.mxu1 %vm4524_vm5, %v4523_v45 }
 0x364   : > { %4292 = vmatprep.mubr.msk.bf16.mxu0 %vm4524_vm5, %v4523_v45 }
 0x3f2   : > { %v2762_v11 = vpop.f32.mrf.mxu1  ;;  %v2881_v47 = vpop.f32.mrf.mxu0 }
 0x3f3   : > { %v2926_v57 = vmax.f32 %v2762_v11, %v2881_v47 }
 0x3f4   : > { %v4202_v14 = vpop.f32.mrf.mxu1  ;;  %v4240_v9 = vpop.f32.mrf.mxu0 }
 0x3f5   : > { %v2930_v6 = vpack.c.bf16 %v2926_v57, %v2926_v57 }
 0x3f6   : > { %v2765_v28 = vpop.f32.mrf.mxu1  ;;  %v2884_v38 = vpop.f32.mrf.mxu0 }
 0x3f8   : > { %v4203_v3 = vpop.f32.mrf.mxu1  ;;  %v4241_v27 = vpop.f32.mrf.mxu0 }
 0x3fa   : > { %v2769_v53 = vpop.f32.mrf.mxu1 }
 0x3fb   : > { %v2888_v13 = vpop.f32.mrf.mxu0 }
 0x3fc   : > { %v4206_v46 = vpop.f32.mrf.mxu1  ;;  %v4450_v13 = vld [vmem:[%s5617_s1 + $0x250] ss:$0 sps:$4 sm:$0x33]  }
 0x3fd   : > { %v4244_v8 = vpop.f32.mrf.mxu0  ;;  %v3270_v46 = vsel %vm3268_vm8, %v4450_v13, 0 }
 0x3fe   : > { %v2771_v49 = vpop.f32.mrf.mxu1  ;;  %v4451_v8 = vld [vmem:[%s5617_s1 + $0x248] sm:$0xff]  }
 0x3ff   : > { %v2890_v50 = vpop.f32.mrf.mxu0  ;;  %v4452_v49 = vld [vmem:[%s5617_s1 + $0x240] sm:$0xff]  }
 0x400   : > { %v4207_v26 = vpop.f32.mrf.mxu1  ;;  %v4453_v50 = vld [vmem:[%s5617_s1 + $0x238] sm:$0xff]  }
 0x401   : > { %v4245_v21 = vpop.f32.mrf.mxu0  ;;  %v4454_v26 = vld [vmem:[%s5617_s1 + $0x230] sm:$0xff]  }
 0x402   : > { %v2775_v39 = vpop.f32.mrf.mxu1  ;;  %v4455_v21 = vld [vmem:[%s5617_s1 + $0x228] sm:$0xff]  }
 0x403   : > { %v2894_v58 = vpop.f32.mrf.mxu0 }
 0x404   : > { %v2927_v2 = vmax.f32 %v2775_v39, %v2894_v58  ;;  %v4210_v37 = vpop.f32.mrf.mxu1  ;;  %v4456_v39 = vld [vmem:[%s5617_s1 + $0x220] sm:$0xff]  }
 0x405   : > { %v4248_v40 = vpop.f32.mrf.mxu0 }
 0x406   : > { %v2936_v30 = vpack.c.bf16 %v2927_v2, %v2927_v2  ;;  %v2778_v25 = vpop.f32.mrf.mxu1 }
 0x407   : > { %v2897_v62 = vpop.f32.mrf.mxu0 }
 0x408   : > { %4273 = vmatmul.mubr.msk.bf16.vlgmr.msra.gmra.mxu1 %vm2957_vm7, %v2936_v30  ;;  %v4211_v24 = vpop.f32.mrf.mxu1 }
 0x409   : > { %4277 = vmatpush3.bf16.msra.mxu1 %v3023_v16  ;;  %v4249_v60 = vpop.f32.mrf.mxu0  ;;  %4282 = vmatprep.mubr.msk.bf16.mxu1 %vm4524_vm5, %v4523_v45 }
 0x40a   : > { %v2782_v42 = vpop.f32.mrf.mxu1  ;;  %4278 = vmatprep.subr.bf16.mxu1 %v4523_v45 }
 0x40b   : > { %v2901_v52 = vpop.f32.mrf.mxu0 }
 0x40c   : > { %v4214_v7 = vpop.f32.mrf.mxu1 }
 0x40d   : > { %4279 = vmatpush3.bf16.msra.mxu1 %v4444_v17  ;;  %v4252_v5 = vpop.f32.mrf.mxu0 }
 0x40e   : > { %v2784_v20 = vpop.f32.mrf.mxu1  ;;  %4280 = vmatprep.subr.bf16.mxu1 %v4523_v45 }
 0x40f   : > { %v2903_v23 = vpop.f32.mrf.mxu0 }
 0x410   : > { %v4215_v0 = vpop.f32.mrf.mxu1 }
 0x411   : > { %4281 = vmatpush3.bf16.msra.mxu1 %v4445_v29  ;;  %v4253_v55 = vpop.f32.mrf.mxu0 }
 0x412   : > { %v2788_v56 = vpop.f32.mrf.mxu1  ;;  %4296 = vmatprep.subr.bf16.mxu1 %v4523_v45  ;;  %v3619_v55 = vld [vmem:[%s5618_s2 + $0x3] ss:$0 sm:$0xff] }
 0x413   : > { %v2907_v18 = vpop.f32.mrf.mxu0 }
 0x414   : > { %v2928_v44 = vmax.f32 %v2788_v56, %v2907_v18  ;;  %4283 = vmatmul.mubr.msk.bf16.vlgmr.msra.gmra.mxu1 %vm2957_vm7, %v2930_v6  ;;  %v4218_v15 = vpop.f32.mrf.mxu1 }
 0x415   : > { %v4256_v19 = vpop.f32.mrf.mxu0  ;;  %4297 = vmatpush3.bf16.msra.mxu1 %v3158_v51  ;;  %4302 = vmatprep.mubr.msk.bf16.mxu1 %vm4524_vm5, %v4523_v45 }
 0x416   : > { %v3065_v48 = vpack.c.bf16 %v2928_v44, %v2928_v44  ;;  %v2791_v22 = vpop.f32.mrf.mxu1  ;;  %4298 = vmatprep.subr.bf16.mxu1 %v4523_v45 }
 0x417   : > { %v2910_v12 = vpop.f32.mrf.mxu0 }
 0x418   : > { %4293 = vmatmul.mubr.msk.bf16.vlgmr.msra.gmra.mxu0 %vm2957_vm7, %v3065_v48  ;;  %v4219_v1 = vpop.f32.mrf.mxu1 }
 0x419   : > { %v4257_v4 = vpop.f32.mrf.mxu0  ;;  %4299 = vmatpush3.bf16.msra.mxu1 %v4448_v36  ;;  %4320 = vmatprep.mubr.msk.bf16.mxu0 %vm4524_vm5, %v4523_v45 }
 0x41a   : > { %v2795_v33 = vpop.f32.mrf.mxu1  ;;  %4300 = vmatprep.subr.bf16.mxu1 %v4523_v45  ;;  %4307 = vmatpush3.bf16.msra.mxu0 %v3270_v46 }
 0x41b   : > { %v2914_v61 = vpop.f32.mrf.mxu0  ;;  %4308 = vmatprep.subr.bf16.mxu0 %v4523_v45 }
 0x41c   : > { %v4222_v35 = vpop.f32.mrf.mxu1 }
 0x41d   : > { %v4260_v54 = vpop.f32.mrf.mxu0  ;;  %4301 = vmatpush3.bf16.msra.mxu1 %v4449_v59 }
 0x41e   : > { %v2797_v32 = vpop.f32.mrf.mxu1  ;;  %4309 = vmatpush3.bf16.msra.mxu0 %v4451_v8 }
 0x41f   : > { %v2916_v43 = vpop.f32.mrf.mxu0  ;;  %4310 = vmatprep.subr.bf16.mxu0 %v4523_v45 }
 0x420   : > { %v4223_v63 = vpop.f32.mrf.mxu1 }
 0x421   : > { %v4261_v31 = vpop.f32.mrf.mxu0 }
 0x422   : > { %v2801_v34 = vpop.f32.mrf.mxu1  ;;  %4311 = vmatpush3.bf16.msra.mxu0 %v4452_v49 }
 0x423   : > { %v2920_v11 = vpop.f32.mrf.mxu0  ;;  %4312 = vmatprep.subr.bf16.mxu0 %v4523_v45 }
 0x424   : > { %v2929_v47 = vmax.f32 %v2801_v34, %v2920_v11  ;;  %v4226_v14 = vpop.f32.mrf.mxu1 }
 0x425   : > { %v4264_v9 = vpop.f32.mrf.mxu0 }
 0x426   : > { %v3133_v28 = vpack.c.bf16 %v2929_v47, %v2929_v47  ;;  %v2804_v38 = vpop.f32.mrf.mxu1  ;;  %4313 = vmatpush3.bf16.msra.mxu0 %v4453_v50 }
 0x427   : > { %v2923_v3 = vpop.f32.mrf.mxu0  ;;  %4314 = vmatprep.subr.bf16.mxu0 %v4523_v45 }
 0x428   : > { %4303 = vmatmul.mubr.msk.bf16.vlgmr.msra.gmra.mxu1 %vm2957_vm7, %v3133_v28  ;;  %v4227_v27 = vpop.f32.mrf.mxu1 }
 0x429   : > { %v4265_v53 = vpop.f32.mrf.mxu0 }
 0x42a   : > { %4315 = vmatpush3.bf16.msra.mxu0 %v4454_v26 }
 0x42b   : > { %4316 = vmatprep.subr.bf16.mxu0 %v4523_v45 }
 0x42e   : > { %4317 = vmatpush3.bf16.msra.mxu0 %v4455_v21 }
 0x42f   : > { %4318 = vmatprep.subr.bf16.mxu0 %v4523_v45  ;;  %v3618_v45 = vld [vmem:[%s5618_s2 + $0x2] ss:$0 sm:$0xff] }
 0x432   : > { %4319 = vmatpush3.bf16.msra.mxu0 %v4456_v39 }
 0x4c8   : > { %v2998_v41 = vpop.f32.mrf.mxu1 }
 0x4ca   : > { %v4274_v58 = vpop.f32.mrf.mxu1 }
 0x4cc   : > { %v3001_v2 = vpop.f32.mrf.mxu1 }
 0x4ce   : > { %v4275_v37 = vpop.f32.mrf.mxu1 }
 0x4d4   : > { %v3059_v40 = vpop.f32.mrf.mxu1 }
 0x4d5   : > { %v3060_v42 = vadd.f32 %v3059_v40, %v2998_v41 }
 0x4d6   : > { %v4284_v30 = vpop.f32.mrf.mxu1 }
 0x4d8   : > { %v3062_v25 = vpop.f32.mrf.mxu1  ;;  %v3126_v16 = vpop.f32.mrf.mxu0 }
 0x4d9   : > { %v3132_v52 = vadd.f32 %v3126_v16, %v3060_v42 }
 0x4da   : > { %v4285_v62 = vpop.f32.mrf.mxu1  ;;  %v4294_v24 = vpop.f32.mrf.mxu0 }
 0x4dc   : > { %v3129_v60 = vpop.f32.mrf.mxu0 }
 0x4de   : > { %v4295_v17 = vpop.f32.mrf.mxu0 }
 0x4e8   : > { %v3194_v7 = vpop.f32.mrf.mxu1 }
 0x4e9   : > { %v3200_v5 = vadd.f32 %v3194_v7, %v3132_v52 }
 0x4ea   : > { %v4304_v29 = vpop.f32.mrf.mxu1 }
 0x4eb   : > { %v3205_v57 = vadd.f32 %v3618_v45, %v3200_v5 }
 0x4ec   : > { %v3197_v20 = vpop.f32.mrf.mxu1 }
 0x4ed   : > { %v3206_v10 = vmax.f32 %v3205_v57, 0.0 }
 0x4ee   : > { %v4305_v23 = vpop.f32.mrf.mxu1 }
 0x4ef   : > { %v3207_v0 = vpack.c.bf16 %v3206_v10, %v3206_v10 }
 0x4f1   : > { %4321 = vmatmul.mubr.msk.bf16.vlgmr.msra.gmra.mxu0 %vm3264_vm9, %v3207_v0 }
 0x5b1   : > { %v3306_v6 = vpop.f32.mrf.mxu0 }
 0x5b2   : > { %v3307_v56 = vadd.f32 %v3619_v55, %v3306_v6 }
 0x5b3   : > { %v4322_v51 = vpop.f32.mrf.mxu0 }
 0x5b4   : > { %v3313_v18 = vsel %vm3312_vm10, %v3307_v56, -inf }
 0x5b5   : > { %3314 = vmax.xlane.f32.xlu0 %v3313_v18  ;;  %v3309_v44 = vpop.f32.mrf.mxu0 }
 0x5b7   : > { %v4323_v15 = vpop.f32.mrf.mxu0 }
 0x63e   : > { %v3315_v19 = vpop.xlane.xlu0 %3314 }
 0x63f   : > { %v3316_v36 = vsub.f32 %v3307_v56, %v3315_v19 }
 0x641   : > { %v3317_v48 = vmul.f32 1.442695, %v3316_v36 }
 0x643   : > { %4457 = vpow2.f32 %v3317_v48 }
 0x650   : > { %v4458_v22 = vpop.eup %4457 }
 0x651   : > { %v3319_v12 = vsel %vm3312_vm10, %v4458_v22, 0.0 }
 0x652   : > { %3320 = vadd.xlane.f32.xlu0 %v3319_v12 }
 0x6db   : > { %v3321_v1 = vpop.xlane.xlu0 %3320 }
 0x6dc   : > { %4459 = vlog2.f32 %v3321_v1 }
 0x6e9   : > { %v4460_v4 = vpop.eup %4459 }
 0x6ea   : > { %v3323_v59 = vmul.f32 0.6931472, %v4460_v4 }
 0x6ec   : > { %v3324_v33 = vadd.f32 %v3323_v59, %v3315_v19 }
 0x6ee   : > { %v3325_v61 = vsub.f32 %v3307_v56, %v3324_v33 }
 0x6f0   : > { %3326 = vst.msk [vmem:[%s164_s28] sm:$0xff] %vm3312_vm10, %v3325_v61 }
 0x6f1   : > { %4474 = shalt.err (!%p4471_p3)
}
 0x6f2   : > { %s4475_s10 = scalar_lea.hbm %s3339_s5, 128  ;;  %s4479_s19 = scalar_lea.hbm %s5619_s3, 256 }
 0x6f3   : > { %p4476_p4 = scmp.ne.s32.totalorder %s3339_s5, %s4475_s10  ;;  %p4480_p9 = scmp.lt.s32.totalorder %s3339_s5, %s5619_s3 }
 0x6f4   : > { %p4481_p10 = scmp.lt.s32.totalorder %s4479_s19, %s4475_s10 }
 0x6f5   : > { %p4477_p7 = pnand %p4476_p4, %p4584_p5 }
 0x6f6   : > { %p4482_p11 = por %p4481_p10, %p4480_p9 }
 0x6f7   : > { %p4478_p8 = pneg %p4477_p7 }
 0x6f9   : > { %p4483_p12 = pnand %p4482_p11, %p4478_p8 }
 0x6fb   : > { %4486 = shalt.err (!%p4483_p12)
}
 0x6fc   : > { %4341 = dma.vmem_to_hbm [thread:$0]  (%p4584_p5), %s3342_s29, 128, %s3339_s5, %s3328_s6  }
 0x6fd PF: > { %p4347_p13 = scmp.ge.s32.totalorder %s4521_s15, 2  ;;  %s3353_s25 = sand.u32 1, %s4509_s12  }
 0x6fe   : > { %s3354_s26 = scalar_lea.sflag [#allocation3], %s3353_s25 }
 0x6ff   : > { %p4344_p0 = pnand %p4347_p13, %p4588_p6 }
 0x701   : > { %p4345_p1 = pneg %p4344_p0 }
 0x703   : > { %4504 = dma.done.wait (%p4345_p1), %s3354_s26, 128  }
 0x704   : > { %4506 = vsyncadd (%p4345_p1), %s3354_s26, 4294967168  ;;  %p13_p2 = scmp.ge.s32.totalorder %s4571_s18, 4   ;;  %s5686_s12 = smov %s4513_s13 }
 0x705   : > { %s5687_s13 = smov %s4517_s14  ;;  %s5688_s14 = smov %s4582_s21 }
 0x706   : > { %s5689_s15 = smov %s4571_s18  ;;  %15 = sbr.rel (!%p13_p2) target bundleno = 3 (0x3), region = 67 }
 0x70b   :  { %3359 = vsyncpa [#allocation3], 1 }
 0x70c   :  { %3361 = vsyncpa [#allocation3 + $0x1], 1 }

</bundles_post_ra>
